<compile_context>
chip_gen: v7x
topology: tpu7x:2x2x1
jax: 0.10.0
libtpu: 0.0.40
codegen_flags: <defaults>
</compile_context>

<pallas_src>
import jax
import jax.numpy as jnp
from jax import lax
from jax.experimental import pallas as pl
from jax.experimental.pallas import tpu as pltpu


def _round_up(x, m):
    return (x + m - 1) // m * m


# --------------------------- Pallas kernel -----------------------------------

def _bilstm_kernel(x_ref, wih_ref, bih_ref, whh_ref, wef_ref, web_ref, bemb_ref,
                   out_ref, gin, h_fb, c_f, c_b, hs_f, hs_b):
    """Fused bidirectional LSTM + embedding Linear.

    x_ref    : (T*Bp, nIn) bf16   flattened (time-major) padded input
    wih_ref  : (nIn, 8H)   bf16   [Wih_fwd | Wih_bwd] (pre-transposed, [i,f,o,g])
    bih_ref  : (1, 8H)     f32    [b_fwd | b_bwd]     (b_ih + b_hh fused)
    whh_ref  : (2H, 8H)    bf16   block-diagonal [Whh_f 0; 0 Whh_b]
    wef/web  : (H, Np)     bf16   embedding rows per direction (lane-padded)
    bemb_ref : (1, Np)     f32    embedding bias (lane-padded)
    out_ref  : (T*Bp, Np)  f32    final embedded output (lane-dense store)
    gin      : (T*Bp, 8H)  f32    precomputed input gates, both directions
    h_fb     : (Bp, 2H)    f32    packed [h_f | h_b]
    c_f/c_b  : (Bp, H)     f32    cell state per direction
    hs_f/hs_b: (T*Bp, H)   f32    per-step hidden sequences (embedding input)
    """
    TB, _ = gin.shape
    Bp, H2 = h_fb.shape
    H = H2 // 2
    G = 4 * H
    T = TB // Bp

    # (1) time-batched input projection for BOTH directions: one well-shaped
    #     bf16 MXU matmul with M = T*Bp instead of 2*T tiny M=Bp matmuls.
    gin[...] = (jnp.dot(x_ref[...], wih_ref[...],
                        preferred_element_type=jnp.float32) + bih_ref[...])

    # (2) zero initial states (PyTorch default h0 = c0 = 0).
    h_fb[...] = jnp.zeros_like(h_fb)
    c_f[...] = jnp.zeros_like(c_f)
    c_b[...] = jnp.zeros_like(c_b)

    whh = whh_ref[...]  # bf16 block-diagonal recurrent weights

    def nonlin(g4):
        # gate column order is [i, f, o, g]: sigmoid / tanh each run once on the
        # full (Bp, 4H) vreg; H-wide result slices are cheap static selects.
        # (Sub-128-lane slices are moot at production H >= 128.)
        s = jax.nn.sigmoid(g4)
        th = jnp.tanh(g4)
        return s[:, 0:H], s[:, H:2 * H], s[:, 2 * H:3 * H], th[:, 3 * H:4 * H]

    def step(t, carry):
        tb = T - 1 - t

        # single fused recurrent matmul for both directions (block-diag W_hh)
        g_rec = jnp.dot(h_fb[...].astype(jnp.bfloat16), whh,
                        preferred_element_type=jnp.float32)        # (Bp, 8H)

        gin_t = gin[pl.ds(pl.multiple_of(t * Bp, Bp), Bp), :]      # (Bp, 8H)
        gin_tb = gin[pl.ds(pl.multiple_of(tb * Bp, Bp), Bp), :]    # (Bp, 8H)
        gf = g_rec[:, :G] + gin_t[:, :G]       # forward gates, time index t
        gb = g_rec[:, G:] + gin_tb[:, G:]      # backward gates, time index T-1-t

        i_f, f_f, o_f, g_f = nonlin(gf)
        i_b, f_b, o_b, g_b = nonlin(gb)

        cf_new = f_f * c_f[...] + i_f * g_f
        cb_new = f_b * c_b[...] + i_b * g_b
        hf_new = o_f * jnp.tanh(cf_new)
        hb_new = o_b * jnp.tanh(cb_new)

        c_f[...] = cf_new
        c_b[...] = cb_new
        h_fb[:, :H] = hf_new
        h_fb[:, H:] = hb_new
        hs_f[pl.ds(pl.multiple_of(t * Bp, Bp), Bp), :] = hf_new
        hs_b[pl.ds(pl.multiple_of(tb * Bp, Bp), Bp), :] = hb_new
        return carry

    # capped unroll: keeps LLO visibility without instruction-memory blow-up
    lax.fori_loop(0, T, step, 0, unroll=min(T, 8))

    # (3) embedding Linear hoisted out of the recurrence: two lane-dense
    #     M = T*Bp matmuls + one bias add (no per-step RMW / broadcast).
    out_ref[...] = (
        jnp.dot(hs_f[...].astype(jnp.bfloat16), wef_ref[...],
                preferred_element_type=jnp.float32)
        + jnp.dot(hs_b[...].astype(jnp.bfloat16), web_ref[...],
                  preferred_element_type=jnp.float32)
        + bemb_ref[...])


# --------------------------- wrapper ------------------------------------------

def bidirectional_lstm_forward(x, params):
    """Equivalent of BidirectionalLSTM.forward: LSTM -> view -> Linear -> view."""
    T, B, nIn = x.shape
    H = params["whh_f"].shape[0]
    nOut = params["w_emb"].shape[1]

    Bp = _round_up(B, 8)        # fill f32 sublanes in the per-step (Bp, H) tiles
    Np = _round_up(nOut, 128)   # lane-dense output stores

    def reorder(w):
        # [i, f, g, o] -> [i, f, o, g] so sigmoid covers a contiguous 3H block
        i, f, g, o = jnp.split(w, 4, axis=-1)
        return jnp.concatenate([i, f, o, g], axis=-1)

    x_p = x if Bp == B else jnp.pad(x, ((0, 0), (0, Bp - B), (0, 0)))
    x2d = x_p.reshape(T * Bp, nIn).astype(jnp.bfloat16)

    # fused input-projection weights / bias for both directions
    wih_cat = jnp.concatenate(
        [reorder(params["wih_f"]), reorder(params["wih_b"])],
        axis=1).astype(jnp.bfloat16)                                # (nIn, 8H)
    b_cat = jnp.concatenate(
        [reorder(params["b_f"]), reorder(params["b_b"])],
        axis=1).astype(jnp.float32)                                 # (1, 8H)

    # block-diagonal recurrent weights: one matmul drives both directions
    zero = jnp.zeros((H, 4 * H), jnp.float32)
    whh_blk = jnp.concatenate(
        [jnp.concatenate([reorder(params["whh_f"]), zero], axis=1),
         jnp.concatenate([zero, reorder(params["whh_b"])], axis=1)],
        axis=0).astype(jnp.bfloat16)                                # (2H, 8H)

    # embedding weight split per direction (no fwd/bwd concat in the kernel)
    w_emb_f = params["w_emb"][:H]          # (H, nOut)
    w_emb_b = params["w_emb"][H:]          # (H, nOut)
    b_emb = params["b_emb"]                # (1, nOut)
    if Np != nOut:
        pad = ((0, 0), (0, Np - nOut))
        w_emb_f = jnp.pad(w_emb_f, pad)
        w_emb_b = jnp.pad(w_emb_b, pad)
        b_emb = jnp.pad(b_emb, pad)
    w_emb_f = w_emb_f.astype(jnp.bfloat16)
    w_emb_b = w_emb_b.astype(jnp.bfloat16)
    b_emb = b_emb.astype(jnp.float32)

    # explicit VMEM budget sized from the resident buffers (double-buffered
    # inputs + scratch + output), clamped to physical limits.
    resident = (
        2 * (x2d.size * 2 + wih_cat.size * 2 + whh_blk.size * 2
             + (w_emb_f.size + w_emb_b.size) * 2
             + (b_cat.size + b_emb.size) * 4)
        + T * Bp * 8 * H * 4            # gin
        + T * Bp * Np * 4 * 2           # out (double-buffered)
        + 2 * T * Bp * H * 4            # hs_f / hs_b
        + 4 * Bp * H * 4)               # h_fb, c_f, c_b
    vmem_limit = int(min(max(2 * resident + (4 << 20), 16 << 20), 64 << 20))

    out_p = pl.pallas_call(
        _bilstm_kernel,
        out_shape=jax.ShapeDtypeStruct((T * Bp, Np), jnp.float32),
        grid_spec=pltpu.PrefetchScalarGridSpec(
            num_scalar_prefetch=0,
            grid=(1,),
            in_specs=[
                pl.BlockSpec((T * Bp, nIn), lambda i: (0, 0)),
                pl.BlockSpec((nIn, 8 * H), lambda i: (0, 0)),
                pl.BlockSpec((1, 8 * H), lambda i: (0, 0)),
                pl.BlockSpec((2 * H, 8 * H), lambda i: (0, 0)),
                pl.BlockSpec((H, Np), lambda i: (0, 0)),
                pl.BlockSpec((H, Np), lambda i: (0, 0)),
                pl.BlockSpec((1, Np), lambda i: (0, 0)),
            ],
            out_specs=pl.BlockSpec((T * Bp, Np), lambda i: (0, 0)),
            scratch_shapes=[
                pltpu.VMEM((T * Bp, 8 * H), jnp.float32),   # gin (input gates)
                pltpu.VMEM((Bp, 2 * H), jnp.float32),       # h_fb packed state
                pltpu.VMEM((Bp, H), jnp.float32),           # c_f
                pltpu.VMEM((Bp, H), jnp.float32),           # c_b
                pltpu.VMEM((T * Bp, H), jnp.float32),       # hs_f
                pltpu.VMEM((T * Bp, H), jnp.float32),       # hs_b
            ]),
        compiler_params=pltpu.CompilerParams(
            dimension_semantics=("arbitrary",),
            vmem_limit_bytes=vmem_limit),
    )(x2d, wih_cat, b_cat, whh_blk, w_emb_f, w_emb_b, b_emb)

    # strip batch / lane padding (padded rows carry harmless bias-driven state)
    return out_p.reshape(T, Bp, Np)[:, :B, :nOut]


# --------------------------- pure-JAX reference -------------------------------

def _lstm_ref(x, wih, whh, b, reverse=False):
    T, B, _ = x.shape
    H = whh.shape[0]

    def step(carry, x_t):
        h, c = carry
        gates = x_t @ wih + h @ whh + b
        i, f, g, o = jnp.split(gates, 4, axis=-1)
        i = jax.nn.sigmoid(i)
        f = jax.nn.sigmoid(f)
        g = jnp.tanh(g)
        o = jax.nn.sigmoid(o)
        c = f * c + i * g
        h = o * jnp.tanh(c)
        return (h, c), h

    init = (jnp.zeros((B, H), jnp.float32), jnp.zeros((B, H), jnp.float32))
    xs = x[::-1] if reverse else x
    _, hs = jax.lax.scan(step, init, xs)
    return hs[::-1] if reverse else hs


def _forward_ref(x, params):
    hf = _lstm_ref(x, params["wih_f"], params["whh_f"], params["b_f"], reverse=False)
    hb = _lstm_ref(x, params["wih_b"], params["whh_b"], params["b_b"], reverse=True)
    rec = jnp.concatenate([hf, hb], axis=-1)
    T, B, H2 = rec.shape
    out = rec.reshape(T * B, H2) @ params["w_emb"] + params["b_emb"]
    return out.reshape(T, B, -1)


# --------------------------- main ---------------------------------------------

if __name__ == "__main__":
    T, B, nIn, nHidden, nOut = 8, 2, 16, 32, 16
    H = nHidden

    key = jax.random.PRNGKey(0)
    keys = jax.random.split(key, 9)
    s = 0.1
    # Weights stored pre-transposed vs. PyTorch: W_ih is (nIn, 4H), W_hh is (H, 4H).
    # Biases are the fused (b_ih + b_hh), which is what the LSTM cell consumes.
    params = {
        "wih_f": s * jax.random.normal(keys[0], (nIn, 4 * H), jnp.float32),
        "whh_f": s * jax.random.normal(keys[1], (H, 4 * H), jnp.float32),
        "b_f":   s * jax.random.normal(keys[2], (1, 4 * H), jnp.float32),
        "wih_b": s * jax.random.normal(keys[3], (nIn, 4 * H), jnp.float32),
        "whh_b": s * jax.random.normal(keys[4], (H, 4 * H), jnp.float32),
        "b_b":   s * jax.random.normal(keys[5], (1, 4 * H), jnp.float32),
        "w_emb": s * jax.random.normal(keys[6], (2 * H, nOut), jnp.float32),
        "b_emb": s * jax.random.normal(keys[7], (1, nOut), jnp.float32),
    }
    x = jax.random.normal(keys[8], (T, B, nIn), jnp.float32)

    out = bidirectional_lstm_forward(x, params)
    out = jax.block_until_ready(out)

    ref = _forward_ref(x, params)
    assert out.shape == (T, B, nOut), out.shape
    # tolerance relaxed vs. the pure-f32 version: MXU operands are bf16
    # (f32 accumulation, f32 gate math / state).
    assert jnp.allclose(out, ref, atol=2e-2, rtol=2e-2), \
        float(jnp.max(jnp.abs(out - ref)))

    print("KERNEL_OK")
</pallas_src>

<mosaic_0001>
module attributes {stable_mosaic.version = 11 : i64} {
  func.func @_bilstm_kernel(%arg0: i32, %arg1: memref<64x16xbf16, #tpu.memory_space<vmem>>, %arg2: memref<16x256xbf16, #tpu.memory_space<vmem>>, %arg3: memref<1x256xf32, #tpu.memory_space<vmem>>, %arg4: memref<64x256xbf16, #tpu.memory_space<vmem>>, %arg5: memref<32x128xbf16, #tpu.memory_space<vmem>>, %arg6: memref<32x128xbf16, #tpu.memory_space<vmem>>, %arg7: memref<1x128xf32, #tpu.memory_space<vmem>>, %arg8: memref<64x128xf32, #tpu.memory_space<vmem>>, %arg9: memref<64x256xf32, #tpu.memory_space<vmem>>, %arg10: memref<8x64xf32, #tpu.memory_space<vmem>>, %arg11: memref<8x32xf32, #tpu.memory_space<vmem>>, %arg12: memref<8x32xf32, #tpu.memory_space<vmem>>, %arg13: memref<64x32xf32, #tpu.memory_space<vmem>>, %arg14: memref<64x32xf32, #tpu.memory_space<vmem>>) attributes {dimension_semantics = [#tpu.dimension_semantics<arbitrary>], iteration_bounds = array<i64: 1>, scalar_prefetch = 0 : i64, scratch_operands = 6 : i64, tpu.core_type = #tpu.core_type<tc>, window_params = [{pipeline_mode = #tpu.pipeline_mode<synchronous>, transform_indices = @transform_0, window_bounds = array<i64: 64, 16>}, {pipeline_mode = #tpu.pipeline_mode<synchronous>, transform_indices = @transform_1, window_bounds = array<i64: 16, 256>}, {pipeline_mode = #tpu.pipeline_mode<synchronous>, transform_indices = @transform_2, window_bounds = array<i64: 1, 256>}, {pipeline_mode = #tpu.pipeline_mode<synchronous>, transform_indices = @transform_3, window_bounds = array<i64: 64, 256>}, {pipeline_mode = #tpu.pipeline_mode<synchronous>, transform_indices = @transform_4, window_bounds = array<i64: 32, 128>}, {pipeline_mode = #tpu.pipeline_mode<synchronous>, transform_indices = @transform_5, window_bounds = array<i64: 32, 128>}, {pipeline_mode = #tpu.pipeline_mode<synchronous>, transform_indices = @transform_6, window_bounds = array<i64: 1, 128>}, {pipeline_mode = #tpu.pipeline_mode<synchronous>, transform_indices = @transform_7, window_bounds = array<i64: 64, 128>}]} {
    %c0 = arith.constant 0 : index
    %c0_0 = arith.constant 0 : index
    %0 = vector.load %arg1[%c0, %c0_0] : memref<64x16xbf16, #tpu.memory_space<vmem>>, vector<64x16xbf16>
    %c0_1 = arith.constant 0 : index
    %c0_2 = arith.constant 0 : index
    %1 = vector.load %arg2[%c0_1, %c0_2] : memref<16x256xbf16, #tpu.memory_space<vmem>>, vector<16x256xbf16>
    %cst = arith.constant dense<0.000000e+00> : vector<64x256xf32>
    %2 = tpu.matmul %0, %1, %cst {dimension_numbers = #tpu.dot_dimension_numbers<[1], [0], [0], [1], [0, 0, 1, 1], [], []>} : vector<64x16xbf16>, vector<16x256xbf16>, vector<64x256xf32> -> vector<64x256xf32>
    %c0_3 = arith.constant 0 : index
    %c0_4 = arith.constant 0 : index
    %3 = vector.load %arg3[%c0_3, %c0_4] : memref<1x256xf32, #tpu.memory_space<vmem>>, vector<1x256xf32>
    %4 = vector.broadcast %3 : vector<1x256xf32> to vector<64x256xf32>
    %5 = arith.addf %2, %4 : vector<64x256xf32>
    %c0_5 = arith.constant 0 : index
    %c0_6 = arith.constant 0 : index
    %6 = vector.load %arg9[%c0_5, %c0_6] : memref<64x256xf32, #tpu.memory_space<vmem>>, vector<64x256xf32>
    tpu.vector_store %arg9[%c0_5, %c0_6], %5 {strides = array<i32>} : memref<64x256xf32, #tpu.memory_space<vmem>>, vector<64x256xf32>,
    %cst_7 = arith.constant 0.000000e+00 : f32
    %7 = vector.broadcast %cst_7 : f32 to vector<8x64xf32>
    %c0_8 = arith.constant 0 : index
    %c0_9 = arith.constant 0 : index
    %8 = vector.load %arg10[%c0_8, %c0_9] : memref<8x64xf32, #tpu.memory_space<vmem>>, vector<8x64xf32>
    tpu.vector_store %arg10[%c0_8, %c0_9], %7 {strides = array<i32>} : memref<8x64xf32, #tpu.memory_space<vmem>>, vector<8x64xf32>,
    %cst_10 = arith.constant 0.000000e+00 : f32
    %9 = vector.broadcast %cst_10 : f32 to vector<8x32xf32>
    %c0_11 = arith.constant 0 : index
    %c0_12 = arith.constant 0 : index
    %10 = vector.load %arg11[%c0_11, %c0_12] : memref<8x32xf32, #tpu.memory_space<vmem>>, vector<8x32xf32>
    tpu.vector_store %arg11[%c0_11, %c0_12], %9 {strides = array<i32>} : memref<8x32xf32, #tpu.memory_space<vmem>>, vector<8x32xf32>,
    %cst_13 = arith.constant 0.000000e+00 : f32
    %11 = vector.broadcast %cst_13 : f32 to vector<8x32xf32>
    %c0_14 = arith.constant 0 : index
    %c0_15 = arith.constant 0 : index
    %12 = vector.load %arg12[%c0_14, %c0_15] : memref<8x32xf32, #tpu.memory_space<vmem>>, vector<8x32xf32>
    tpu.vector_store %arg12[%c0_14, %c0_15], %11 {strides = array<i32>} : memref<8x32xf32, #tpu.memory_space<vmem>>, vector<8x32xf32>,
    %c0_16 = arith.constant 0 : index
    %c0_17 = arith.constant 0 : index
    %13 = vector.load %arg4[%c0_16, %c0_17] : memref<64x256xbf16, #tpu.memory_space<vmem>>, vector<64x256xbf16>
    %c0_i32 = arith.constant 0 : i32
    %c7_i32 = arith.constant 7 : i32
    %14 = arith.subi %c7_i32, %c0_i32 : i32
    %c0_18 = arith.constant 0 : index
    %c0_19 = arith.constant 0 : index
    %15 = vector.load %arg10[%c0_18, %c0_19] : memref<8x64xf32, #tpu.memory_space<vmem>>, vector<8x64xf32>
    %16 = arith.truncf %15 : vector<8x64xf32> to vector<8x64xbf16>
    %cst_20 = arith.constant dense<0.000000e+00> : vector<8x256xf32>
    %17 = tpu.matmul %16, %13, %cst_20 {dimension_numbers = #tpu.dot_dimension_numbers<[1], [0], [0], [1], [0, 0, 1, 1], [], []>} : vector<8x64xbf16>, vector<64x256xbf16>, vector<8x256xf32> -> vector<8x256xf32>
    %c8_i32 = arith.constant 8 : i32
    %18 = arith.muli %c0_i32, %c8_i32 : i32
    %19 = tpu.assume_multiple %18, 8 : i32
    %20 = arith.index_cast %19 : i32 to index
    %c0_21 = arith.constant 0 : index
    %21 = vector.load %arg9[%20, %c0_21] : memref<64x256xf32, #tpu.memory_space<vmem>>, vector<8x256xf32>
    %c8_i32_22 = arith.constant 8 : i32
    %22 = arith.muli %14, %c8_i32_22 : i32
    %23 = tpu.assume_multiple %22, 8 : i32
    %24 = arith.index_cast %23 : i32 to index
    %c0_23 = arith.constant 0 : index
    %25 = vector.load %arg9[%24, %c0_23] : memref<64x256xf32, #tpu.memory_space<vmem>>, vector<8x256xf32>
    %26 = vector.extract_strided_slice %17 {offsets = [0, 0], sizes = [8, 128], strides = [1, 1]} : vector<8x256xf32> to vector<8x128xf32>
    %27 = vector.extract_strided_slice %21 {offsets = [0, 0], sizes = [8, 128], strides = [1, 1]} : vector<8x256xf32> to vector<8x128xf32>
    %28 = arith.addf %26, %27 : vector<8x128xf32>
    %29 = vector.extract_strided_slice %17 {offsets = [0, 128], sizes = [8, 128], strides = [1, 1]} : vector<8x256xf32> to vector<8x128xf32>
    %30 = vector.extract_strided_slice %25 {offsets = [0, 128], sizes = [8, 128], strides = [1, 1]} : vector<8x256xf32> to vector<8x128xf32>
    %31 = arith.addf %29, %30 : vector<8x128xf32>
    %32 = arith.negf %28 : vector<8x128xf32>
    %33 = math.exp %32 : vector<8x128xf32>
    %cst_24 = arith.constant 1.000000e+00 : f32
    %34 = vector.broadcast %cst_24 : f32 to vector<8x128xf32>
    %35 = arith.addf %34, %33 : vector<8x128xf32>
    %36 = arith.divf %34, %35 : vector<8x128xf32>
    %37 = math.tanh %28 : vector<8x128xf32>
    %38 = vector.extract_strided_slice %36 {offsets = [0, 0], sizes = [8, 32], strides = [1, 1]} : vector<8x128xf32> to vector<8x32xf32>
    %39 = vector.extract_strided_slice %36 {offsets = [0, 32], sizes = [8, 32], strides = [1, 1]} : vector<8x128xf32> to vector<8x32xf32>
    %40 = vector.extract_strided_slice %36 {offsets = [0, 64], sizes = [8, 32], strides = [1, 1]} : vector<8x128xf32> to vector<8x32xf32>
    %41 = vector.extract_strided_slice %37 {offsets = [0, 96], sizes = [8, 32], strides = [1, 1]} : vector<8x128xf32> to vector<8x32xf32>
    %42 = arith.negf %31 : vector<8x128xf32>
    %43 = math.exp %42 : vector<8x128xf32>
    %cst_25 = arith.constant 1.000000e+00 : f32
    %44 = vector.broadcast %cst_25 : f32 to vector<8x128xf32>
    %45 = arith.addf %44, %43 : vector<8x128xf32>
    %46 = arith.divf %44, %45 : vector<8x128xf32>
    %47 = math.tanh %31 : vector<8x128xf32>
    %48 = vector.extract_strided_slice %46 {offsets = [0, 0], sizes = [8, 32], strides = [1, 1]} : vector<8x128xf32> to vector<8x32xf32>
    %49 = vector.extract_strided_slice %46 {offsets = [0, 32], sizes = [8, 32], strides = [1, 1]} : vector<8x128xf32> to vector<8x32xf32>
    %50 = vector.extract_strided_slice %46 {offsets = [0, 64], sizes = [8, 32], strides = [1, 1]} : vector<8x128xf32> to vector<8x32xf32>
    %51 = vector.extract_strided_slice %47 {offsets = [0, 96], sizes = [8, 32], strides = [1, 1]} : vector<8x128xf32> to vector<8x32xf32>
    %c0_26 = arith.constant 0 : index
    %c0_27 = arith.constant 0 : index
    %52 = vector.load %arg11[%c0_26, %c0_27] : memref<8x32xf32, #tpu.memory_space<vmem>>, vector<8x32xf32>
    %53 = arith.mulf %39, %52 : vector<8x32xf32>
    %54 = arith.mulf %38, %41 : vector<8x32xf32>
    %55 = arith.addf %53, %54 : vector<8x32xf32>
    %c0_28 = arith.constant 0 : index
    %c0_29 = arith.constant 0 : index
    %56 = vector.load %arg12[%c0_28, %c0_29] : memref<8x32xf32, #tpu.memory_space<vmem>>, vector<8x32xf32>
    %57 = arith.mulf %49, %56 : vector<8x32xf32>
    %58 = arith.mulf %48, %51 : vector<8x32xf32>
    %59 = arith.addf %57, %58 : vector<8x32xf32>
    %60 = math.tanh %55 : vector<8x32xf32>
    %61 = arith.mulf %40, %60 : vector<8x32xf32>
    %62 = math.tanh %59 : vector<8x32xf32>
    %63 = arith.mulf %50, %62 : vector<8x32xf32>
    %c0_30 = arith.constant 0 : index
    %c0_31 = arith.constant 0 : index
    %64 = vector.load %arg11[%c0_30, %c0_31] : memref<8x32xf32, #tpu.memory_space<vmem>>, vector<8x32xf32>
    tpu.vector_store %arg11[%c0_30, %c0_31], %55 {strides = array<i32>} : memref<8x32xf32, #tpu.memory_space<vmem>>, vector<8x32xf32>,
    %c0_32 = arith.constant 0 : index
    %c0_33 = arith.constant 0 : index
    %65 = vector.load %arg12[%c0_32, %c0_33] : memref<8x32xf32, #tpu.memory_space<vmem>>, vector<8x32xf32>
    tpu.vector_store %arg12[%c0_32, %c0_33], %59 {strides = array<i32>} : memref<8x32xf32, #tpu.memory_space<vmem>>, vector<8x32xf32>,
    %c0_34 = arith.constant 0 : index
    %c0_35 = arith.constant 0 : index
    %66 = vector.load %arg10[%c0_34, %c0_35] : memref<8x64xf32, #tpu.memory_space<vmem>>, vector<8x32xf32>
    tpu.vector_store %arg10[%c0_34, %c0_35], %61 {strides = array<i32>} : memref<8x64xf32, #tpu.memory_space<vmem>>, vector<8x32xf32>,
    %c0_36 = arith.constant 0 : index
    %c32 = arith.constant 32 : index
    %67 = vector.load %arg10[%c0_36, %c32] : memref<8x64xf32, #tpu.memory_space<vmem>>, vector<8x32xf32>
    tpu.vector_store %arg10[%c0_36, %c32], %63 {strides = array<i32>} : memref<8x64xf32, #tpu.memory_space<vmem>>, vector<8x32xf32>,
    %c8_i32_37 = arith.constant 8 : i32
    %68 = arith.muli %c0_i32, %c8_i32_37 : i32
    %69 = tpu.assume_multiple %68, 8 : i32
    %70 = arith.index_cast %69 : i32 to index
    %c0_38 = arith.constant 0 : index
    %71 = vector.load %arg13[%70, %c0_38] : memref<64x32xf32, #tpu.memory_space<vmem>>, vector<8x32xf32>
    tpu.vector_store %arg13[%70, %c0_38], %61 {strides = array<i32>} : memref<64x32xf32, #tpu.memory_space<vmem>>, vector<8x32xf32>,
    %c8_i32_39 = arith.constant 8 : i32
    %72 = arith.muli %14, %c8_i32_39 : i32
    %73 = tpu.assume_multiple %72, 8 : i32
    %74 = arith.index_cast %73 : i32 to index
    %c0_40 = arith.constant 0 : index
    %75 = vector.load %arg14[%74, %c0_40] : memref<64x32xf32, #tpu.memory_space<vmem>>, vector<8x32xf32>
    tpu.vector_store %arg14[%74, %c0_40], %63 {strides = array<i32>} : memref<64x32xf32, #tpu.memory_space<vmem>>, vector<8x32xf32>,
    %c1_i32 = arith.constant 1 : i32
    %c7_i32_41 = arith.constant 7 : i32
    %76 = arith.subi %c7_i32_41, %c1_i32 : i32
    %c0_42 = arith.constant 0 : index
    %c0_43 = arith.constant 0 : index
    %77 = vector.load %arg10[%c0_42, %c0_43] : memref<8x64xf32, #tpu.memory_space<vmem>>, vector<8x64xf32>
    %78 = arith.truncf %77 : vector<8x64xf32> to vector<8x64xbf16>
    %cst_44 = arith.constant dense<0.000000e+00> : vector<8x256xf32>
    %79 = tpu.matmul %78, %13, %cst_44 {dimension_numbers = #tpu.dot_dimension_numbers<[1], [0], [0], [1], [0, 0, 1, 1], [], []>} : vector<8x64xbf16>, vector<64x256xbf16>, vector<8x256xf32> -> vector<8x256xf32>
    %c8_i32_45 = arith.constant 8 : i32
    %80 = arith.muli %c1_i32, %c8_i32_45 : i32
    %81 = tpu.assume_multiple %80, 8 : i32
    %82 = arith.index_cast %81 : i32 to index
    %c0_46 = arith.constant 0 : index
    %83 = vector.load %arg9[%82, %c0_46] : memref<64x256xf32, #tpu.memory_space<vmem>>, vector<8x256xf32>
    %c8_i32_47 = arith.constant 8 : i32
    %84 = arith.muli %76, %c8_i32_47 : i32
    %85 = tpu.assume_multiple %84, 8 : i32
    %86 = arith.index_cast %85 : i32 to index
    %c0_48 = arith.constant 0 : index
    %87 = vector.load %arg9[%86, %c0_48] : memref<64x256xf32, #tpu.memory_space<vmem>>, vector<8x256xf32>
    %88 = vector.extract_strided_slice %79 {offsets = [0, 0], sizes = [8, 128], strides = [1, 1]} : vector<8x256xf32> to vector<8x128xf32>
    %89 = vector.extract_strided_slice %83 {offsets = [0, 0], sizes = [8, 128], strides = [1, 1]} : vector<8x256xf32> to vector<8x128xf32>
    %90 = arith.addf %88, %89 : vector<8x128xf32>
    %91 = vector.extract_strided_slice %79 {offsets = [0, 128], sizes = [8, 128], strides = [1, 1]} : vector<8x256xf32> to vector<8x128xf32>
    %92 = vector.extract_strided_slice %87 {offsets = [0, 128], sizes = [8, 128], strides = [1, 1]} : vector<8x256xf32> to vector<8x128xf32>
    %93 = arith.addf %91, %92 : vector<8x128xf32>
    %94 = arith.negf %90 : vector<8x128xf32>
    %95 = math.exp %94 : vector<8x128xf32>
    %cst_49 = arith.constant 1.000000e+00 : f32
    %96 = vector.broadcast %cst_49 : f32 to vector<8x128xf32>
    %97 = arith.addf %96, %95 : vector<8x128xf32>
    %98 = arith.divf %96, %97 : vector<8x128xf32>
    %99 = math.tanh %90 : vector<8x128xf32>
    %100 = vector.extract_strided_slice %98 {offsets = [0, 0], sizes = [8, 32], strides = [1, 1]} : vector<8x128xf32> to vector<8x32xf32>
    %101 = vector.extract_strided_slice %98 {offsets = [0, 32], sizes = [8, 32], strides = [1, 1]} : vector<8x128xf32> to vector<8x32xf32>
    %102 = vector.extract_strided_slice %98 {offsets = [0, 64], sizes = [8, 32], strides = [1, 1]} : vector<8x128xf32> to vector<8x32xf32>
    %103 = vector.extract_strided_slice %99 {offsets = [0, 96], sizes = [8, 32], strides = [1, 1]} : vector<8x128xf32> to vector<8x32xf32>
    %104 = arith.negf %93 : vector<8x128xf32>
    %105 = math.exp %104 : vector<8x128xf32>
    %cst_50 = arith.constant 1.000000e+00 : f32
    %106 = vector.broadcast %cst_50 : f32 to vector<8x128xf32>
    %107 = arith.addf %106, %105 : vector<8x128xf32>
    %108 = arith.divf %106, %107 : vector<8x128xf32>
    %109 = math.tanh %93 : vector<8x128xf32>
    %110 = vector.extract_strided_slice %108 {offsets = [0, 0], sizes = [8, 32], strides = [1, 1]} : vector<8x128xf32> to vector<8x32xf32>
    %111 = vector.extract_strided_slice %108 {offsets = [0, 32], sizes = [8, 32], strides = [1, 1]} : vector<8x128xf32> to vector<8x32xf32>
    %112 = vector.extract_strided_slice %108 {offsets = [0, 64], sizes = [8, 32], strides = [1, 1]} : vector<8x128xf32> to vector<8x32xf32>
    %113 = vector.extract_strided_slice %109 {offsets = [0, 96], sizes = [8, 32], strides = [1, 1]} : vector<8x128xf32> to vector<8x32xf32>
    %c0_51 = arith.constant 0 : index
    %c0_52 = arith.constant 0 : index
    %114 = vector.load %arg11[%c0_51, %c0_52] : memref<8x32xf32, #tpu.memory_space<vmem>>, vector<8x32xf32>
    %115 = arith.mulf %101, %114 : vector<8x32xf32>
    %116 = arith.mulf %100, %103 : vector<8x32xf32>
    %117 = arith.addf %115, %116 : vector<8x32xf32>
    %c0_53 = arith.constant 0 : index
    %c0_54 = arith.constant 0 : index
    %118 = vector.load %arg12[%c0_53, %c0_54] : memref<8x32xf32, #tpu.memory_space<vmem>>, vector<8x32xf32>
    %119 = arith.mulf %111, %118 : vector<8x32xf32>
    %120 = arith.mulf %110, %113 : vector<8x32xf32>
    %121 = arith.addf %119, %120 : vector<8x32xf32>
    %122 = math.tanh %117 : vector<8x32xf32>
    %123 = arith.mulf %102, %122 : vector<8x32xf32>
    %124 = math.tanh %121 : vector<8x32xf32>
    %125 = arith.mulf %112, %124 : vector<8x32xf32>
    %c0_55 = arith.constant 0 : index
    %c0_56 = arith.constant 0 : index
    %126 = vector.load %arg11[%c0_55, %c0_56] : memref<8x32xf32, #tpu.memory_space<vmem>>, vector<8x32xf32>
    tpu.vector_store %arg11[%c0_55, %c0_56], %117 {strides = array<i32>} : memref<8x32xf32, #tpu.memory_space<vmem>>, vector<8x32xf32>,
    %c0_57 = arith.constant 0 : index
    %c0_58 = arith.constant 0 : index
    %127 = vector.load %arg12[%c0_57, %c0_58] : memref<8x32xf32, #tpu.memory_space<vmem>>, vector<8x32xf32>
    tpu.vector_store %arg12[%c0_57, %c0_58], %121 {strides = array<i32>} : memref<8x32xf32, #tpu.memory_space<vmem>>, vector<8x32xf32>,
    %c0_59 = arith.constant 0 : index
    %c0_60 = arith.constant 0 : index
    %128 = vector.load %arg10[%c0_59, %c0_60] : memref<8x64xf32, #tpu.memory_space<vmem>>, vector<8x32xf32>
    tpu.vector_store %arg10[%c0_59, %c0_60], %123 {strides = array<i32>} : memref<8x64xf32, #tpu.memory_space<vmem>>, vector<8x32xf32>,
    %c0_61 = arith.constant 0 : index
    %c32_62 = arith.constant 32 : index
    %129 = vector.load %arg10[%c0_61, %c32_62] : memref<8x64xf32, #tpu.memory_space<vmem>>, vector<8x32xf32>
    tpu.vector_store %arg10[%c0_61, %c32_62], %125 {strides = array<i32>} : memref<8x64xf32, #tpu.memory_space<vmem>>, vector<8x32xf32>,
    %c8_i32_63 = arith.constant 8 : i32
    %130 = arith.muli %c1_i32, %c8_i32_63 : i32
    %131 = tpu.assume_multiple %130, 8 : i32
    %132 = arith.index_cast %131 : i32 to index
    %c0_64 = arith.constant 0 : index
    %133 = vector.load %arg13[%132, %c0_64] : memref<64x32xf32, #tpu.memory_space<vmem>>, vector<8x32xf32>
    tpu.vector_store %arg13[%132, %c0_64], %123 {strides = array<i32>} : memref<64x32xf32, #tpu.memory_space<vmem>>, vector<8x32xf32>,
    %c8_i32_65 = arith.constant 8 : i32
    %134 = arith.muli %76, %c8_i32_65 : i32
    %135 = tpu.assume_multiple %134, 8 : i32
    %136 = arith.index_cast %135 : i32 to index
    %c0_66 = arith.constant 0 : index
    %137 = vector.load %arg14[%136, %c0_66] : memref<64x32xf32, #tpu.memory_space<vmem>>, vector<8x32xf32>
    tpu.vector_store %arg14[%136, %c0_66], %125 {strides = array<i32>} : memref<64x32xf32, #tpu.memory_space<vmem>>, vector<8x32xf32>,
    %c2_i32 = arith.constant 2 : i32
    %c7_i32_67 = arith.constant 7 : i32
    %138 = arith.subi %c7_i32_67, %c2_i32 : i32
    %c0_68 = arith.constant 0 : index
    %c0_69 = arith.constant 0 : index
    %139 = vector.load %arg10[%c0_68, %c0_69] : memref<8x64xf32, #tpu.memory_space<vmem>>, vector<8x64xf32>
    %140 = arith.truncf %139 : vector<8x64xf32> to vector<8x64xbf16>
    %cst_70 = arith.constant dense<0.000000e+00> : vector<8x256xf32>
    %141 = tpu.matmul %140, %13, %cst_70 {dimension_numbers = #tpu.dot_dimension_numbers<[1], [0], [0], [1], [0, 0, 1, 1], [], []>} : vector<8x64xbf16>, vector<64x256xbf16>, vector<8x256xf32> -> vector<8x256xf32>
    %c8_i32_71 = arith.constant 8 : i32
    %142 = arith.muli %c2_i32, %c8_i32_71 : i32
    %143 = tpu.assume_multiple %142, 8 : i32
    %144 = arith.index_cast %143 : i32 to index
    %c0_72 = arith.constant 0 : index
    %145 = vector.load %arg9[%144, %c0_72] : memref<64x256xf32, #tpu.memory_space<vmem>>, vector<8x256xf32>
    %c8_i32_73 = arith.constant 8 : i32
    %146 = arith.muli %138, %c8_i32_73 : i32
    %147 = tpu.assume_multiple %146, 8 : i32
    %148 = arith.index_cast %147 : i32 to index
    %c0_74 = arith.constant 0 : index
    %149 = vector.load %arg9[%148, %c0_74] : memref<64x256xf32, #tpu.memory_space<vmem>>, vector<8x256xf32>
    %150 = vector.extract_strided_slice %141 {offsets = [0, 0], sizes = [8, 128], strides = [1, 1]} : vector<8x256xf32> to vector<8x128xf32>
    %151 = vector.extract_strided_slice %145 {offsets = [0, 0], sizes = [8, 128], strides = [1, 1]} : vector<8x256xf32> to vector<8x128xf32>
    %152 = arith.addf %150, %151 : vector<8x128xf32>
    %153 = vector.extract_strided_slice %141 {offsets = [0, 128], sizes = [8, 128], strides = [1, 1]} : vector<8x256xf32> to vector<8x128xf32>
    %154 = vector.extract_strided_slice %149 {offsets = [0, 128], sizes = [8, 128], strides = [1, 1]} : vector<8x256xf32> to vector<8x128xf32>
    %155 = arith.addf %153, %154 : vector<8x128xf32>
    %156 = arith.negf %152 : vector<8x128xf32>
    %157 = math.exp %156 : vector<8x128xf32>
    %cst_75 = arith.constant 1.000000e+00 : f32
    %158 = vector.broadcast %cst_75 : f32 to vector<8x128xf32>
    %159 = arith.addf %158, %157 : vector<8x128xf32>
    %160 = arith.divf %158, %159 : vector<8x128xf32>
    %161 = math.tanh %152 : vector<8x128xf32>
    %162 = vector.extract_strided_slice %160 {offsets = [0, 0], sizes = [8, 32], strides = [1, 1]} : vector<8x128xf32> to vector<8x32xf32>
    %163 = vector.extract_strided_slice %160 {offsets = [0, 32], sizes = [8, 32], strides = [1, 1]} : vector<8x128xf32> to vector<8x32xf32>
    %164 = vector.extract_strided_slice %160 {offsets = [0, 64], sizes = [8, 32], strides = [1, 1]} : vector<8x128xf32> to vector<8x32xf32>
    %165 = vector.extract_strided_slice %161 {offsets = [0, 96], sizes = [8, 32], strides = [1, 1]} : vector<8x128xf32> to vector<8x32xf32>
    %166 = arith.negf %155 : vector<8x128xf32>
    %167 = math.exp %166 : vector<8x128xf32>
    %cst_76 = arith.constant 1.000000e+00 : f32
    %168 = vector.broadcast %cst_76 : f32 to vector<8x128xf32>
    %169 = arith.addf %168, %167 : vector<8x128xf32>
    %170 = arith.divf %168, %169 : vector<8x128xf32>
    %171 = math.tanh %155 : vector<8x128xf32>
    %172 = vector.extract_strided_slice %170 {offsets = [0, 0], sizes = [8, 32], strides = [1, 1]} : vector<8x128xf32> to vector<8x32xf32>
    %173 = vector.extract_strided_slice %170 {offsets = [0, 32], sizes = [8, 32], strides = [1, 1]} : vector<8x128xf32> to vector<8x32xf32>
    %174 = vector.extract_strided_slice %170 {offsets = [0, 64], sizes = [8, 32], strides = [1, 1]} : vector<8x128xf32> to vector<8x32xf32>
    %175 = vector.extract_strided_slice %171 {offsets = [0, 96], sizes = [8, 32], strides = [1, 1]} : vector<8x128xf32> to vector<8x32xf32>
    %c0_77 = arith.constant 0 : index
    %c0_78 = arith.constant 0 : index
    %176 = vector.load %arg11[%c0_77, %c0_78] : memref<8x32xf32, #tpu.memory_space<vmem>>, vector<8x32xf32>
    %177 = arith.mulf %163, %176 : vector<8x32xf32>
    %178 = arith.mulf %162, %165 : vector<8x32xf32>
    %179 = arith.addf %177, %178 : vector<8x32xf32>
    %c0_79 = arith.constant 0 : index
    %c0_80 = arith.constant 0 : index
    %180 = vector.load %arg12[%c0_79, %c0_80] : memref<8x32xf32, #tpu.memory_space<vmem>>, vector<8x32xf32>
    %181 = arith.mulf %173, %180 : vector<8x32xf32>
    %182 = arith.mulf %172, %175 : vector<8x32xf32>
    %183 = arith.addf %181, %182 : vector<8x32xf32>
    %184 = math.tanh %179 : vector<8x32xf32>
    %185 = arith.mulf %164, %184 : vector<8x32xf32>
    %186 = math.tanh %183 : vector<8x32xf32>
    %187 = arith.mulf %174, %186 : vector<8x32xf32>
    %c0_81 = arith.constant 0 : index
    %c0_82 = arith.constant 0 : index
    %188 = vector.load %arg11[%c0_81, %c0_82] : memref<8x32xf32, #tpu.memory_space<vmem>>, vector<8x32xf32>
    tpu.vector_store %arg11[%c0_81, %c0_82], %179 {strides = array<i32>} : memref<8x32xf32, #tpu.memory_space<vmem>>, vector<8x32xf32>,
    %c0_83 = arith.constant 0 : index
    %c0_84 = arith.constant 0 : index
    %189 = vector.load %arg12[%c0_83, %c0_84] : memref<8x32xf32, #tpu.memory_space<vmem>>, vector<8x32xf32>
    tpu.vector_store %arg12[%c0_83, %c0_84], %183 {strides = array<i32>} : memref<8x32xf32, #tpu.memory_space<vmem>>, vector<8x32xf32>,
    %c0_85 = arith.constant 0 : index
    %c0_86 = arith.constant 0 : index
    %190 = vector.load %arg10[%c0_85, %c0_86] : memref<8x64xf32, #tpu.memory_space<vmem>>, vector<8x32xf32>
    tpu.vector_store %arg10[%c0_85, %c0_86], %185 {strides = array<i32>} : memref<8x64xf32, #tpu.memory_space<vmem>>, vector<8x32xf32>,
    %c0_87 = arith.constant 0 : index
    %c32_88 = arith.constant 32 : index
    %191 = vector.load %arg10[%c0_87, %c32_88] : memref<8x64xf32, #tpu.memory_space<vmem>>, vector<8x32xf32>
    tpu.vector_store %arg10[%c0_87, %c32_88], %187 {strides = array<i32>} : memref<8x64xf32, #tpu.memory_space<vmem>>, vector<8x32xf32>,
    %c8_i32_89 = arith.constant 8 : i32
    %192 = arith.muli %c2_i32, %c8_i32_89 : i32
    %193 = tpu.assume_multiple %192, 8 : i32
    %194 = arith.index_cast %193 : i32 to index
    %c0_90 = arith.constant 0 : index
    %195 = vector.load %arg13[%194, %c0_90] : memref<64x32xf32, #tpu.memory_space<vmem>>, vector<8x32xf32>
    tpu.vector_store %arg13[%194, %c0_90], %185 {strides = array<i32>} : memref<64x32xf32, #tpu.memory_space<vmem>>, vector<8x32xf32>,
    %c8_i32_91 = arith.constant 8 : i32
    %196 = arith.muli %138, %c8_i32_91 : i32
    %197 = tpu.assume_multiple %196, 8 : i32
    %198 = arith.index_cast %197 : i32 to index
    %c0_92 = arith.constant 0 : index
    %199 = vector.load %arg14[%198, %c0_92] : memref<64x32xf32, #tpu.memory_space<vmem>>, vector<8x32xf32>
    tpu.vector_store %arg14[%198, %c0_92], %187 {strides = array<i32>} : memref<64x32xf32, #tpu.memory_space<vmem>>, vector<8x32xf32>,
    %c3_i32 = arith.constant 3 : i32
    %c7_i32_93 = arith.constant 7 : i32
    %200 = arith.subi %c7_i32_93, %c3_i32 : i32
    %c0_94 = arith.constant 0 : index
    %c0_95 = arith.constant 0 : index
    %201 = vector.load %arg10[%c0_94, %c0_95] : memref<8x64xf32, #tpu.memory_space<vmem>>, vector<8x64xf32>
    %202 = arith.truncf %201 : vector<8x64xf32> to vector<8x64xbf16>
    %cst_96 = arith.constant dense<0.000000e+00> : vector<8x256xf32>
    %203 = tpu.matmul %202, %13, %cst_96 {dimension_numbers = #tpu.dot_dimension_numbers<[1], [0], [0], [1], [0, 0, 1, 1], [], []>} : vector<8x64xbf16>, vector<64x256xbf16>, vector<8x256xf32> -> vector<8x256xf32>
    %c8_i32_97 = arith.constant 8 : i32
    %204 = arith.muli %c3_i32, %c8_i32_97 : i32
    %205 = tpu.assume_multiple %204, 8 : i32
    %206 = arith.index_cast %205 : i32 to index
    %c0_98 = arith.constant 0 : index
    %207 = vector.load %arg9[%206, %c0_98] : memref<64x256xf32, #tpu.memory_space<vmem>>, vector<8x256xf32>
    %c8_i32_99 = arith.constant 8 : i32
    %208 = arith.muli %200, %c8_i32_99 : i32
    %209 = tpu.assume_multiple %208, 8 : i32
    %210 = arith.index_cast %209 : i32 to index
    %c0_100 = arith.constant 0 : index
    %211 = vector.load %arg9[%210, %c0_100] : memref<64x256xf32, #tpu.memory_space<vmem>>, vector<8x256xf32>
    %212 = vector.extract_strided_slice %203 {offsets = [0, 0], sizes = [8, 128], strides = [1, 1]} : vector<8x256xf32> to vector<8x128xf32>
    %213 = vector.extract_strided_slice %207 {offsets = [0, 0], sizes = [8, 128], strides = [1, 1]} : vector<8x256xf32> to vector<8x128xf32>
    %214 = arith.addf %212, %213 : vector<8x128xf32>
    %215 = vector.extract_strided_slice %203 {offsets = [0, 128], sizes = [8, 128], strides = [1, 1]} : vector<8x256xf32> to vector<8x128xf32>
    %216 = vector.extract_strided_slice %211 {offsets = [0, 128], sizes = [8, 128], strides = [1, 1]} : vector<8x256xf32> to vector<8x128xf32>
    %217 = arith.addf %215, %216 : vector<8x128xf32>
    %218 = arith.negf %214 : vector<8x128xf32>
    %219 = math.exp %218 : vector<8x128xf32>
    %cst_101 = arith.constant 1.000000e+00 : f32
    %220 = vector.broadcast %cst_101 : f32 to vector<8x128xf32>
    %221 = arith.addf %220, %219 : vector<8x128xf32>
    %222 = arith.divf %220, %221 : vector<8x128xf32>
    %223 = math.tanh %214 : vector<8x128xf32>
    %224 = vector.extract_strided_slice %222 {offsets = [0, 0], sizes = [8, 32], strides = [1, 1]} : vector<8x128xf32> to vector<8x32xf32>
    %225 = vector.extract_strided_slice %222 {offsets = [0, 32], sizes = [8, 32], strides = [1, 1]} : vector<8x128xf32> to vector<8x32xf32>
    %226 = vector.extract_strided_slice %222 {offsets = [0, 64], sizes = [8, 32], strides = [1, 1]} : vector<8x128xf32> to vector<8x32xf32>
    %227 = vector.extract_strided_slice %223 {offsets = [0, 96], sizes = [8, 32], strides = [1, 1]} : vector<8x128xf32> to vector<8x32xf32>
    %228 = arith.negf %217 : vector<8x128xf32>
    %229 = math.exp %228 : vector<8x128xf32>
    %cst_102 = arith.constant 1.000000e+00 : f32
    %230 = vector.broadcast %cst_102 : f32 to vector<8x128xf32>
    %231 = arith.addf %230, %229 : vector<8x128xf32>
    %232 = arith.divf %230, %231 : vector<8x128xf32>
    %233 = math.tanh %217 : vector<8x128xf32>
    %234 = vector.extract_strided_slice %232 {offsets = [0, 0], sizes = [8, 32], strides = [1, 1]} : vector<8x128xf32> to vector<8x32xf32>
    %235 = vector.extract_strided_slice %232 {offsets = [0, 32], sizes = [8, 32], strides = [1, 1]} : vector<8x128xf32> to vector<8x32xf32>
    %236 = vector.extract_strided_slice %232 {offsets = [0, 64], sizes = [8, 32], strides = [1, 1]} : vector<8x128xf32> to vector<8x32xf32>
    %237 = vector.extract_strided_slice %233 {offsets = [0, 96], sizes = [8, 32], strides = [1, 1]} : vector<8x128xf32> to vector<8x32xf32>
    %c0_103 = arith.constant 0 : index
    %c0_104 = arith.constant 0 : index
    %238 = vector.load %arg11[%c0_103, %c0_104] : memref<8x32xf32, #tpu.memory_space<vmem>>, vector<8x32xf32>
    %239 = arith.mulf %225, %238 : vector<8x32xf32>
    %240 = arith.mulf %224, %227 : vector<8x32xf32>
    %241 = arith.addf %239, %240 : vector<8x32xf32>
    %c0_105 = arith.constant 0 : index
    %c0_106 = arith.constant 0 : index
    %242 = vector.load %arg12[%c0_105, %c0_106] : memref<8x32xf32, #tpu.memory_space<vmem>>, vector<8x32xf32>
    %243 = arith.mulf %235, %242 : vector<8x32xf32>
    %244 = arith.mulf %234, %237 : vector<8x32xf32>
    %245 = arith.addf %243, %244 : vector<8x32xf32>
    %246 = math.tanh %241 : vector<8x32xf32>
    %247 = arith.mulf %226, %246 : vector<8x32xf32>
    %248 = math.tanh %245 : vector<8x32xf32>
    %249 = arith.mulf %236, %248 : vector<8x32xf32>
    %c0_107 = arith.constant 0 : index
    %c0_108 = arith.constant 0 : index
    %250 = vector.load %arg11[%c0_107, %c0_108] : memref<8x32xf32, #tpu.memory_space<vmem>>, vector<8x32xf32>
    tpu.vector_store %arg11[%c0_107, %c0_108], %241 {strides = array<i32>} : memref<8x32xf32, #tpu.memory_space<vmem>>, vector<8x32xf32>,
    %c0_109 = arith.constant 0 : index
    %c0_110 = arith.constant 0 : index
    %251 = vector.load %arg12[%c0_109, %c0_110] : memref<8x32xf32, #tpu.memory_space<vmem>>, vector<8x32xf32>
    tpu.vector_store %arg12[%c0_109, %c0_110], %245 {strides = array<i32>} : memref<8x32xf32, #tpu.memory_space<vmem>>, vector<8x32xf32>,
    %c0_111 = arith.constant 0 : index
    %c0_112 = arith.constant 0 : index
    %252 = vector.load %arg10[%c0_111, %c0_112] : memref<8x64xf32, #tpu.memory_space<vmem>>, vector<8x32xf32>
    tpu.vector_store %arg10[%c0_111, %c0_112], %247 {strides = array<i32>} : memref<8x64xf32, #tpu.memory_space<vmem>>, vector<8x32xf32>,
    %c0_113 = arith.constant 0 : index
    %c32_114 = arith.constant 32 : index
    %253 = vector.load %arg10[%c0_113, %c32_114] : memref<8x64xf32, #tpu.memory_space<vmem>>, vector<8x32xf32>
    tpu.vector_store %arg10[%c0_113, %c32_114], %249 {strides = array<i32>} : memref<8x64xf32, #tpu.memory_space<vmem>>, vector<8x32xf32>,
    %c8_i32_115 = arith.constant 8 : i32
    %254 = arith.muli %c3_i32, %c8_i32_115 : i32
    %255 = tpu.assume_multiple %254, 8 : i32
    %256 = arith.index_cast %255 : i32 to index
    %c0_116 = arith.constant 0 : index
    %257 = vector.load %arg13[%256, %c0_116] : memref<64x32xf32, #tpu.memory_space<vmem>>, vector<8x32xf32>
    tpu.vector_store %arg13[%256, %c0_116], %247 {strides = array<i32>} : memref<64x32xf32, #tpu.memory_space<vmem>>, vector<8x32xf32>,
    %c8_i32_117 = arith.constant 8 : i32
    %258 = arith.muli %200, %c8_i32_117 : i32
    %259 = tpu.assume_multiple %258, 8 : i32
    %260 = arith.index_cast %259 : i32 to index
    %c0_118 = arith.constant 0 : index
    %261 = vector.load %arg14[%260, %c0_118] : memref<64x32xf32, #tpu.memory_space<vmem>>, vector<8x32xf32>
    tpu.vector_store %arg14[%260, %c0_118], %249 {strides = array<i32>} : memref<64x32xf32, #tpu.memory_space<vmem>>, vector<8x32xf32>,
    %c4_i32 = arith.constant 4 : i32
    %c7_i32_119 = arith.constant 7 : i32
    %262 = arith.subi %c7_i32_119, %c4_i32 : i32
    %c0_120 = arith.constant 0 : index
    %c0_121 = arith.constant 0 : index
    %263 = vector.load %arg10[%c0_120, %c0_121] : memref<8x64xf32, #tpu.memory_space<vmem>>, vector<8x64xf32>
    %264 = arith.truncf %263 : vector<8x64xf32> to vector<8x64xbf16>
    %cst_122 = arith.constant dense<0.000000e+00> : vector<8x256xf32>
    %265 = tpu.matmul %264, %13, %cst_122 {dimension_numbers = #tpu.dot_dimension_numbers<[1], [0], [0], [1], [0, 0, 1, 1], [], []>} : vector<8x64xbf16>, vector<64x256xbf16>, vector<8x256xf32> -> vector<8x256xf32>
    %c8_i32_123 = arith.constant 8 : i32
    %266 = arith.muli %c4_i32, %c8_i32_123 : i32
    %267 = tpu.assume_multiple %266, 8 : i32
    %268 = arith.index_cast %267 : i32 to index
    %c0_124 = arith.constant 0 : index
    %269 = vector.load %arg9[%268, %c0_124] : memref<64x256xf32, #tpu.memory_space<vmem>>, vector<8x256xf32>
    %c8_i32_125 = arith.constant 8 : i32
    %270 = arith.muli %262, %c8_i32_125 : i32
    %271 = tpu.assume_multiple %270, 8 : i32
    %272 = arith.index_cast %271 : i32 to index
    %c0_126 = arith.constant 0 : index
    %273 = vector.load %arg9[%272, %c0_126] : memref<64x256xf32, #tpu.memory_space<vmem>>, vector<8x256xf32>
    %274 = vector.extract_strided_slice %265 {offsets = [0, 0], sizes = [8, 128], strides = [1, 1]} : vector<8x256xf32> to vector<8x128xf32>
    %275 = vector.extract_strided_slice %269 {offsets = [0, 0], sizes = [8, 128], strides = [1, 1]} : vector<8x256xf32> to vector<8x128xf32>
    %276 = arith.addf %274, %275 : vector<8x128xf32>
    %277 = vector.extract_strided_slice %265 {offsets = [0, 128], sizes = [8, 128], strides = [1, 1]} : vector<8x256xf32> to vector<8x128xf32>
    %278 = vector.extract_strided_slice %273 {offsets = [0, 128], sizes = [8, 128], strides = [1, 1]} : vector<8x256xf32> to vector<8x128xf32>
    %279 = arith.addf %277, %278 : vector<8x128xf32>
    %280 = arith.negf %276 : vector<8x128xf32>
    %281 = math.exp %280 : vector<8x128xf32>
    %cst_127 = arith.constant 1.000000e+00 : f32
    %282 = vector.broadcast %cst_127 : f32 to vector<8x128xf32>
    %283 = arith.addf %282, %281 : vector<8x128xf32>
    %284 = arith.divf %282, %283 : vector<8x128xf32>
    %285 = math.tanh %276 : vector<8x128xf32>
    %286 = vector.extract_strided_slice %284 {offsets = [0, 0], sizes = [8, 32], strides = [1, 1]} : vector<8x128xf32> to vector<8x32xf32>
    %287 = vector.extract_strided_slice %284 {offsets = [0, 32], sizes = [8, 32], strides = [1, 1]} : vector<8x128xf32> to vector<8x32xf32>
    %288 = vector.extract_strided_slice %284 {offsets = [0, 64], sizes = [8, 32], strides = [1, 1]} : vector<8x128xf32> to vector<8x32xf32>
    %289 = vector.extract_strided_slice %285 {offsets = [0, 96], sizes = [8, 32], strides = [1, 1]} : vector<8x128xf32> to vector<8x32xf32>
    %290 = arith.negf %279 : vector<8x128xf32>
    %291 = math.exp %290 : vector<8x128xf32>
    %cst_128 = arith.constant 1.000000e+00 : f32
    %292 = vector.broadcast %cst_128 : f32 to vector<8x128xf32>
    %293 = arith.addf %292, %291 : vector<8x128xf32>
    %294 = arith.divf %292, %293 : vector<8x128xf32>
    %295 = math.tanh %279 : vector<8x128xf32>
    %296 = vector.extract_strided_slice %294 {offsets = [0, 0], sizes = [8, 32], strides = [1, 1]} : vector<8x128xf32> to vector<8x32xf32>
    %297 = vector.extract_strided_slice %294 {offsets = [0, 32], sizes = [8, 32], strides = [1, 1]} : vector<8x128xf32> to vector<8x32xf32>
    %298 = vector.extract_strided_slice %294 {offsets = [0, 64], sizes = [8, 32], strides = [1, 1]} : vector<8x128xf32> to vector<8x32xf32>
    %299 = vector.extract_strided_slice %295 {offsets = [0, 96], sizes = [8, 32], strides = [1, 1]} : vector<8x128xf32> to vector<8x32xf32>
    %c0_129 = arith.constant 0 : index
    %c0_130 = arith.constant 0 : index
    %300 = vector.load %arg11[%c0_129, %c0_130] : memref<8x32xf32, #tpu.memory_space<vmem>>, vector<8x32xf32>
    %301 = arith.mulf %287, %300 : vector<8x32xf32>
    %302 = arith.mulf %286, %289 : vector<8x32xf32>
    %303 = arith.addf %301, %302 : vector<8x32xf32>
    %c0_131 = arith.constant 0 : index
    %c0_132 = arith.constant 0 : index
    %304 = vector.load %arg12[%c0_131, %c0_132] : memref<8x32xf32, #tpu.memory_space<vmem>>, vector<8x32xf32>
    %305 = arith.mulf %297, %304 : vector<8x32xf32>
    %306 = arith.mulf %296, %299 : vector<8x32xf32>
    %307 = arith.addf %305, %306 : vector<8x32xf32>
    %308 = math.tanh %303 : vector<8x32xf32>
    %309 = arith.mulf %288, %308 : vector<8x32xf32>
    %310 = math.tanh %307 : vector<8x32xf32>
    %311 = arith.mulf %298, %310 : vector<8x32xf32>
    %c0_133 = arith.constant 0 : index
    %c0_134 = arith.constant 0 : index
    %312 = vector.load %arg11[%c0_133, %c0_134] : memref<8x32xf32, #tpu.memory_space<vmem>>, vector<8x32xf32>
    tpu.vector_store %arg11[%c0_133, %c0_134], %303 {strides = array<i32>} : memref<8x32xf32, #tpu.memory_space<vmem>>, vector<8x32xf32>,
    %c0_135 = arith.constant 0 : index
    %c0_136 = arith.constant 0 : index
    %313 = vector.load %arg12[%c0_135, %c0_136] : memref<8x32xf32, #tpu.memory_space<vmem>>, vector<8x32xf32>
    tpu.vector_store %arg12[%c0_135, %c0_136], %307 {strides = array<i32>} : memref<8x32xf32, #tpu.memory_space<vmem>>, vector<8x32xf32>,
    %c0_137 = arith.constant 0 : index
    %c0_138 = arith.constant 0 : index
    %314 = vector.load %arg10[%c0_137, %c0_138] : memref<8x64xf32, #tpu.memory_space<vmem>>, vector<8x32xf32>
    tpu.vector_store %arg10[%c0_137, %c0_138], %309 {strides = array<i32>} : memref<8x64xf32, #tpu.memory_space<vmem>>, vector<8x32xf32>,
    %c0_139 = arith.constant 0 : index
    %c32_140 = arith.constant 32 : index
    %315 = vector.load %arg10[%c0_139, %c32_140] : memref<8x64xf32, #tpu.memory_space<vmem>>, vector<8x32xf32>
    tpu.vector_store %arg10[%c0_139, %c32_140], %311 {strides = array<i32>} : memref<8x64xf32, #tpu.memory_space<vmem>>, vector<8x32xf32>,
    %c8_i32_141 = arith.constant 8 : i32
    %316 = arith.muli %c4_i32, %c8_i32_141 : i32
    %317 = tpu.assume_multiple %316, 8 : i32
    %318 = arith.index_cast %317 : i32 to index
    %c0_142 = arith.constant 0 : index
    %319 = vector.load %arg13[%318, %c0_142] : memref<64x32xf32, #tpu.memory_space<vmem>>, vector<8x32xf32>
    tpu.vector_store %arg13[%318, %c0_142], %309 {strides = array<i32>} : memref<64x32xf32, #tpu.memory_space<vmem>>, vector<8x32xf32>,
    %c8_i32_143 = arith.constant 8 : i32
    %320 = arith.muli %262, %c8_i32_143 : i32
    %321 = tpu.assume_multiple %320, 8 : i32
    %322 = arith.index_cast %321 : i32 to index
    %c0_144 = arith.constant 0 : index
    %323 = vector.load %arg14[%322, %c0_144] : memref<64x32xf32, #tpu.memory_space<vmem>>, vector<8x32xf32>
    tpu.vector_store %arg14[%322, %c0_144], %311 {strides = array<i32>} : memref<64x32xf32, #tpu.memory_space<vmem>>, vector<8x32xf32>,
    %c5_i32 = arith.constant 5 : i32
    %c7_i32_145 = arith.constant 7 : i32
    %324 = arith.subi %c7_i32_145, %c5_i32 : i32
    %c0_146 = arith.constant 0 : index
    %c0_147 = arith.constant 0 : index
    %325 = vector.load %arg10[%c0_146, %c0_147] : memref<8x64xf32, #tpu.memory_space<vmem>>, vector<8x64xf32>
    %326 = arith.truncf %325 : vector<8x64xf32> to vector<8x64xbf16>
    %cst_148 = arith.constant dense<0.000000e+00> : vector<8x256xf32>
    %327 = tpu.matmul %326, %13, %cst_148 {dimension_numbers = #tpu.dot_dimension_numbers<[1], [0], [0], [1], [0, 0, 1, 1], [], []>} : vector<8x64xbf16>, vector<64x256xbf16>, vector<8x256xf32> -> vector<8x256xf32>
    %c8_i32_149 = arith.constant 8 : i32
    %328 = arith.muli %c5_i32, %c8_i32_149 : i32
    %329 = tpu.assume_multiple %328, 8 : i32
    %330 = arith.index_cast %329 : i32 to index
    %c0_150 = arith.constant 0 : index
    %331 = vector.load %arg9[%330, %c0_150] : memref<64x256xf32, #tpu.memory_space<vmem>>, vector<8x256xf32>
    %c8_i32_151 = arith.constant 8 : i32
    %332 = arith.muli %324, %c8_i32_151 : i32
    %333 = tpu.assume_multiple %332, 8 : i32
    %334 = arith.index_cast %333 : i32 to index
    %c0_152 = arith.constant 0 : index
    %335 = vector.load %arg9[%334, %c0_152] : memref<64x256xf32, #tpu.memory_space<vmem>>, vector<8x256xf32>
    %336 = vector.extract_strided_slice %327 {offsets = [0, 0], sizes = [8, 128], strides = [1, 1]} : vector<8x256xf32> to vector<8x128xf32>
    %337 = vector.extract_strided_slice %331 {offsets = [0, 0], sizes = [8, 128], strides = [1, 1]} : vector<8x256xf32> to vector<8x128xf32>
    %338 = arith.addf %336, %337 : vector<8x128xf32>
    %339 = vector.extract_strided_slice %327 {offsets = [0, 128], sizes = [8, 128], strides = [1, 1]} : vector<8x256xf32> to vector<8x128xf32>
    %340 = vector.extract_strided_slice %335 {offsets = [0, 128], sizes = [8, 128], strides = [1, 1]} : vector<8x256xf32> to vector<8x128xf32>
    %341 = arith.addf %339, %340 : vector<8x128xf32>
    %342 = arith.negf %338 : vector<8x128xf32>
    %343 = math.exp %342 : vector<8x128xf32>
    %cst_153 = arith.constant 1.000000e+00 : f32
    %344 = vector.broadcast %cst_153 : f32 to vector<8x128xf32>
    %345 = arith.addf %344, %343 : vector<8x128xf32>
    %346 = arith.divf %344, %345 : vector<8x128xf32>
    %347 = math.tanh %338 : vector<8x128xf32>
    %348 = vector.extract_strided_slice %346 {offsets = [0, 0], sizes = [8, 32], strides = [1, 1]} : vector<8x128xf32> to vector<8x32xf32>
    %349 = vector.extract_strided_slice %346 {offsets = [0, 32], sizes = [8, 32], strides = [1, 1]} : vector<8x128xf32> to vector<8x32xf32>
    %350 = vector.extract_strided_slice %346 {offsets = [0, 64], sizes = [8, 32], strides = [1, 1]} : vector<8x128xf32> to vector<8x32xf32>
    %351 = vector.extract_strided_slice %347 {offsets = [0, 96], sizes = [8, 32], strides = [1, 1]} : vector<8x128xf32> to vector<8x32xf32>
    %352 = arith.negf %341 : vector<8x128xf32>
    %353 = math.exp %352 : vector<8x128xf32>
    %cst_154 = arith.constant 1.000000e+00 : f32
    %354 = vector.broadcast %cst_154 : f32 to vector<8x128xf32>
    %355 = arith.addf %354, %353 : vector<8x128xf32>
    %356 = arith.divf %354, %355 : vector<8x128xf32>
    %357 = math.tanh %341 : vector<8x128xf32>
    %358 = vector.extract_strided_slice %356 {offsets = [0, 0], sizes = [8, 32], strides = [1, 1]} : vector<8x128xf32> to vector<8x32xf32>
    %359 = vector.extract_strided_slice %356 {offsets = [0, 32], sizes = [8, 32], strides = [1, 1]} : vector<8x128xf32> to vector<8x32xf32>
    %360 = vector.extract_strided_slice %356 {offsets = [0, 64], sizes = [8, 32], strides = [1, 1]} : vector<8x128xf32> to vector<8x32xf32>
    %361 = vector.extract_strided_slice %357 {offsets = [0, 96], sizes = [8, 32], strides = [1, 1]} : vector<8x128xf32> to vector<8x32xf32>
    %c0_155 = arith.constant 0 : index
    %c0_156 = arith.constant 0 : index
    %362 = vector.load %arg11[%c0_155, %c0_156] : memref<8x32xf32, #tpu.memory_space<vmem>>, vector<8x32xf32>
    %363 = arith.mulf %349, %362 : vector<8x32xf32>
    %364 = arith.mulf %348, %351 : vector<8x32xf32>
    %365 = arith.addf %363, %364 : vector<8x32xf32>
    %c0_157 = arith.constant 0 : index
    %c0_158 = arith.constant 0 : index
    %366 = vector.load %arg12[%c0_157, %c0_158] : memref<8x32xf32, #tpu.memory_space<vmem>>, vector<8x32xf32>
    %367 = arith.mulf %359, %366 : vector<8x32xf32>
    %368 = arith.mulf %358, %361 : vector<8x32xf32>
    %369 = arith.addf %367, %368 : vector<8x32xf32>
    %370 = math.tanh %365 : vector<8x32xf32>
    %371 = arith.mulf %350, %370 : vector<8x32xf32>
    %372 = math.tanh %369 : vector<8x32xf32>
    %373 = arith.mulf %360, %372 : vector<8x32xf32>
    %c0_159 = arith.constant 0 : index
    %c0_160 = arith.constant 0 : index
    %374 = vector.load %arg11[%c0_159, %c0_160] : memref<8x32xf32, #tpu.memory_space<vmem>>, vector<8x32xf32>
    tpu.vector_store %arg11[%c0_159, %c0_160], %365 {strides = array<i32>} : memref<8x32xf32, #tpu.memory_space<vmem>>, vector<8x32xf32>,
    %c0_161 = arith.constant 0 : index
    %c0_162 = arith.constant 0 : index
    %375 = vector.load %arg12[%c0_161, %c0_162] : memref<8x32xf32, #tpu.memory_space<vmem>>, vector<8x32xf32>
    tpu.vector_store %arg12[%c0_161, %c0_162], %369 {strides = array<i32>} : memref<8x32xf32, #tpu.memory_space<vmem>>, vector<8x32xf32>,
    %c0_163 = arith.constant 0 : index
    %c0_164 = arith.constant 0 : index
    %376 = vector.load %arg10[%c0_163, %c0_164] : memref<8x64xf32, #tpu.memory_space<vmem>>, vector<8x32xf32>
    tpu.vector_store %arg10[%c0_163, %c0_164], %371 {strides = array<i32>} : memref<8x64xf32, #tpu.memory_space<vmem>>, vector<8x32xf32>,
    %c0_165 = arith.constant 0 : index
    %c32_166 = arith.constant 32 : index
    %377 = vector.load %arg10[%c0_165, %c32_166] : memref<8x64xf32, #tpu.memory_space<vmem>>, vector<8x32xf32>
    tpu.vector_store %arg10[%c0_165, %c32_166], %373 {strides = array<i32>} : memref<8x64xf32, #tpu.memory_space<vmem>>, vector<8x32xf32>,
    %c8_i32_167 = arith.constant 8 : i32
    %378 = arith.muli %c5_i32, %c8_i32_167 : i32
    %379 = tpu.assume_multiple %378, 8 : i32
    %380 = arith.index_cast %379 : i32 to index
    %c0_168 = arith.constant 0 : index
    %381 = vector.load %arg13[%380, %c0_168] : memref<64x32xf32, #tpu.memory_space<vmem>>, vector<8x32xf32>
    tpu.vector_store %arg13[%380, %c0_168], %371 {strides = array<i32>} : memref<64x32xf32, #tpu.memory_space<vmem>>, vector<8x32xf32>,
    %c8_i32_169 = arith.constant 8 : i32
    %382 = arith.muli %324, %c8_i32_169 : i32
    %383 = tpu.assume_multiple %382, 8 : i32
    %384 = arith.index_cast %383 : i32 to index
    %c0_170 = arith.constant 0 : index
    %385 = vector.load %arg14[%384, %c0_170] : memref<64x32xf32, #tpu.memory_space<vmem>>, vector<8x32xf32>
    tpu.vector_store %arg14[%384, %c0_170], %373 {strides = array<i32>} : memref<64x32xf32, #tpu.memory_space<vmem>>, vector<8x32xf32>,
    %c6_i32 = arith.constant 6 : i32
    %c7_i32_171 = arith.constant 7 : i32
    %386 = arith.subi %c7_i32_171, %c6_i32 : i32
    %c0_172 = arith.constant 0 : index
    %c0_173 = arith.constant 0 : index
    %387 = vector.load %arg10[%c0_172, %c0_173] : memref<8x64xf32, #tpu.memory_space<vmem>>, vector<8x64xf32>
    %388 = arith.truncf %387 : vector<8x64xf32> to vector<8x64xbf16>
    %cst_174 = arith.constant dense<0.000000e+00> : vector<8x256xf32>
    %389 = tpu.matmul %388, %13, %cst_174 {dimension_numbers = #tpu.dot_dimension_numbers<[1], [0], [0], [1], [0, 0, 1, 1], [], []>} : vector<8x64xbf16>, vector<64x256xbf16>, vector<8x256xf32> -> vector<8x256xf32>
    %c8_i32_175 = arith.constant 8 : i32
    %390 = arith.muli %c6_i32, %c8_i32_175 : i32
    %391 = tpu.assume_multiple %390, 8 : i32
    %392 = arith.index_cast %391 : i32 to index
    %c0_176 = arith.constant 0 : index
    %393 = vector.load %arg9[%392, %c0_176] : memref<64x256xf32, #tpu.memory_space<vmem>>, vector<8x256xf32>
    %c8_i32_177 = arith.constant 8 : i32
    %394 = arith.muli %386, %c8_i32_177 : i32
    %395 = tpu.assume_multiple %394, 8 : i32
    %396 = arith.index_cast %395 : i32 to index
    %c0_178 = arith.constant 0 : index
    %397 = vector.load %arg9[%396, %c0_178] : memref<64x256xf32, #tpu.memory_space<vmem>>, vector<8x256xf32>
    %398 = vector.extract_strided_slice %389 {offsets = [0, 0], sizes = [8, 128], strides = [1, 1]} : vector<8x256xf32> to vector<8x128xf32>
    %399 = vector.extract_strided_slice %393 {offsets = [0, 0], sizes = [8, 128], strides = [1, 1]} : vector<8x256xf32> to vector<8x128xf32>
    %400 = arith.addf %398, %399 : vector<8x128xf32>
    %401 = vector.extract_strided_slice %389 {offsets = [0, 128], sizes = [8, 128], strides = [1, 1]} : vector<8x256xf32> to vector<8x128xf32>
    %402 = vector.extract_strided_slice %397 {offsets = [0, 128], sizes = [8, 128], strides = [1, 1]} : vector<8x256xf32> to vector<8x128xf32>
    %403 = arith.addf %401, %402 : vector<8x128xf32>
    %404 = arith.negf %400 : vector<8x128xf32>
    %405 = math.exp %404 : vector<8x128xf32>
    %cst_179 = arith.constant 1.000000e+00 : f32
    %406 = vector.broadcast %cst_179 : f32 to vector<8x128xf32>
    %407 = arith.addf %406, %405 : vector<8x128xf32>
    %408 = arith.divf %406, %407 : vector<8x128xf32>
    %409 = math.tanh %400 : vector<8x128xf32>
    %410 = vector.extract_strided_slice %408 {offsets = [0, 0], sizes = [8, 32], strides = [1, 1]} : vector<8x128xf32> to vector<8x32xf32>
    %411 = vector.extract_strided_slice %408 {offsets = [0, 32], sizes = [8, 32], strides = [1, 1]} : vector<8x128xf32> to vector<8x32xf32>
    %412 = vector.extract_strided_slice %408 {offsets = [0, 64], sizes = [8, 32], strides = [1, 1]} : vector<8x128xf32> to vector<8x32xf32>
    %413 = vector.extract_strided_slice %409 {offsets = [0, 96], sizes = [8, 32], strides = [1, 1]} : vector<8x128xf32> to vector<8x32xf32>
    %414 = arith.negf %403 : vector<8x128xf32>
    %415 = math.exp %414 : vector<8x128xf32>
    %cst_180 = arith.constant 1.000000e+00 : f32
    %416 = vector.broadcast %cst_180 : f32 to vector<8x128xf32>
    %417 = arith.addf %416, %415 : vector<8x128xf32>
    %418 = arith.divf %416, %417 : vector<8x128xf32>
    %419 = math.tanh %403 : vector<8x128xf32>
    %420 = vector.extract_strided_slice %418 {offsets = [0, 0], sizes = [8, 32], strides = [1, 1]} : vector<8x128xf32> to vector<8x32xf32>
    %421 = vector.extract_strided_slice %418 {offsets = [0, 32], sizes = [8, 32], strides = [1, 1]} : vector<8x128xf32> to vector<8x32xf32>
    %422 = vector.extract_strided_slice %418 {offsets = [0, 64], sizes = [8, 32], strides = [1, 1]} : vector<8x128xf32> to vector<8x32xf32>
    %423 = vector.extract_strided_slice %419 {offsets = [0, 96], sizes = [8, 32], strides = [1, 1]} : vector<8x128xf32> to vector<8x32xf32>
    %c0_181 = arith.constant 0 : index
    %c0_182 = arith.constant 0 : index
    %424 = vector.load %arg11[%c0_181, %c0_182] : memref<8x32xf32, #tpu.memory_space<vmem>>, vector<8x32xf32>
    %425 = arith.mulf %411, %424 : vector<8x32xf32>
    %426 = arith.mulf %410, %413 : vector<8x32xf32>
    %427 = arith.addf %425, %426 : vector<8x32xf32>
    %c0_183 = arith.constant 0 : index
    %c0_184 = arith.constant 0 : index
    %428 = vector.load %arg12[%c0_183, %c0_184] : memref<8x32xf32, #tpu.memory_space<vmem>>, vector<8x32xf32>
    %429 = arith.mulf %421, %428 : vector<8x32xf32>
    %430 = arith.mulf %420, %423 : vector<8x32xf32>
    %431 = arith.addf %429, %430 : vector<8x32xf32>
    %432 = math.tanh %427 : vector<8x32xf32>
    %433 = arith.mulf %412, %432 : vector<8x32xf32>
    %434 = math.tanh %431 : vector<8x32xf32>
    %435 = arith.mulf %422, %434 : vector<8x32xf32>
    %c0_185 = arith.constant 0 : index
    %c0_186 = arith.constant 0 : index
    %436 = vector.load %arg11[%c0_185, %c0_186] : memref<8x32xf32, #tpu.memory_space<vmem>>, vector<8x32xf32>
    tpu.vector_store %arg11[%c0_185, %c0_186], %427 {strides = array<i32>} : memref<8x32xf32, #tpu.memory_space<vmem>>, vector<8x32xf32>,
    %c0_187 = arith.constant 0 : index
    %c0_188 = arith.constant 0 : index
    %437 = vector.load %arg12[%c0_187, %c0_188] : memref<8x32xf32, #tpu.memory_space<vmem>>, vector<8x32xf32>
    tpu.vector_store %arg12[%c0_187, %c0_188], %431 {strides = array<i32>} : memref<8x32xf32, #tpu.memory_space<vmem>>, vector<8x32xf32>,
    %c0_189 = arith.constant 0 : index
    %c0_190 = arith.constant 0 : index
    %438 = vector.load %arg10[%c0_189, %c0_190] : memref<8x64xf32, #tpu.memory_space<vmem>>, vector<8x32xf32>
    tpu.vector_store %arg10[%c0_189, %c0_190], %433 {strides = array<i32>} : memref<8x64xf32, #tpu.memory_space<vmem>>, vector<8x32xf32>,
    %c0_191 = arith.constant 0 : index
    %c32_192 = arith.constant 32 : index
    %439 = vector.load %arg10[%c0_191, %c32_192] : memref<8x64xf32, #tpu.memory_space<vmem>>, vector<8x32xf32>
    tpu.vector_store %arg10[%c0_191, %c32_192], %435 {strides = array<i32>} : memref<8x64xf32, #tpu.memory_space<vmem>>, vector<8x32xf32>,
    %c8_i32_193 = arith.constant 8 : i32
    %440 = arith.muli %c6_i32, %c8_i32_193 : i32
    %441 = tpu.assume_multiple %440, 8 : i32
    %442 = arith.index_cast %441 : i32 to index
    %c0_194 = arith.constant 0 : index
    %443 = vector.load %arg13[%442, %c0_194] : memref<64x32xf32, #tpu.memory_space<vmem>>, vector<8x32xf32>
    tpu.vector_store %arg13[%442, %c0_194], %433 {strides = array<i32>} : memref<64x32xf32, #tpu.memory_space<vmem>>, vector<8x32xf32>,
    %c8_i32_195 = arith.constant 8 : i32
    %444 = arith.muli %386, %c8_i32_195 : i32
    %445 = tpu.assume_multiple %444, 8 : i32
    %446 = arith.index_cast %445 : i32 to index
    %c0_196 = arith.constant 0 : index
    %447 = vector.load %arg14[%446, %c0_196] : memref<64x32xf32, #tpu.memory_space<vmem>>, vector<8x32xf32>
    tpu.vector_store %arg14[%446, %c0_196], %435 {strides = array<i32>} : memref<64x32xf32, #tpu.memory_space<vmem>>, vector<8x32xf32>,
    %c7_i32_197 = arith.constant 7 : i32
    %c7_i32_198 = arith.constant 7 : i32
    %448 = arith.subi %c7_i32_198, %c7_i32_197 : i32
    %c0_199 = arith.constant 0 : index
    %c0_200 = arith.constant 0 : index
    %449 = vector.load %arg10[%c0_199, %c0_200] : memref<8x64xf32, #tpu.memory_space<vmem>>, vector<8x64xf32>
    %450 = arith.truncf %449 : vector<8x64xf32> to vector<8x64xbf16>
    %cst_201 = arith.constant dense<0.000000e+00> : vector<8x256xf32>
    %451 = tpu.matmul %450, %13, %cst_201 {dimension_numbers = #tpu.dot_dimension_numbers<[1], [0], [0], [1], [0, 0, 1, 1], [], []>} : vector<8x64xbf16>, vector<64x256xbf16>, vector<8x256xf32> -> vector<8x256xf32>
    %c8_i32_202 = arith.constant 8 : i32
    %452 = arith.muli %c7_i32_197, %c8_i32_202 : i32
    %453 = tpu.assume_multiple %452, 8 : i32
    %454 = arith.index_cast %453 : i32 to index
    %c0_203 = arith.constant 0 : index
    %455 = vector.load %arg9[%454, %c0_203] : memref<64x256xf32, #tpu.memory_space<vmem>>, vector<8x256xf32>
    %c8_i32_204 = arith.constant 8 : i32
    %456 = arith.muli %448, %c8_i32_204 : i32
    %457 = tpu.assume_multiple %456, 8 : i32
    %458 = arith.index_cast %457 : i32 to index
    %c0_205 = arith.constant 0 : index
    %459 = vector.load %arg9[%458, %c0_205] : memref<64x256xf32, #tpu.memory_space<vmem>>, vector<8x256xf32>
    %460 = vector.extract_strided_slice %451 {offsets = [0, 0], sizes = [8, 128], strides = [1, 1]} : vector<8x256xf32> to vector<8x128xf32>
    %461 = vector.extract_strided_slice %455 {offsets = [0, 0], sizes = [8, 128], strides = [1, 1]} : vector<8x256xf32> to vector<8x128xf32>
    %462 = arith.addf %460, %461 : vector<8x128xf32>
    %463 = vector.extract_strided_slice %451 {offsets = [0, 128], sizes = [8, 128], strides = [1, 1]} : vector<8x256xf32> to vector<8x128xf32>
    %464 = vector.extract_strided_slice %459 {offsets = [0, 128], sizes = [8, 128], strides = [1, 1]} : vector<8x256xf32> to vector<8x128xf32>
    %465 = arith.addf %463, %464 : vector<8x128xf32>
    %466 = arith.negf %462 : vector<8x128xf32>
    %467 = math.exp %466 : vector<8x128xf32>
    %cst_206 = arith.constant 1.000000e+00 : f32
    %468 = vector.broadcast %cst_206 : f32 to vector<8x128xf32>
    %469 = arith.addf %468, %467 : vector<8x128xf32>
    %470 = arith.divf %468, %469 : vector<8x128xf32>
    %471 = math.tanh %462 : vector<8x128xf32>
    %472 = vector.extract_strided_slice %470 {offsets = [0, 0], sizes = [8, 32], strides = [1, 1]} : vector<8x128xf32> to vector<8x32xf32>
    %473 = vector.extract_strided_slice %470 {offsets = [0, 32], sizes = [8, 32], strides = [1, 1]} : vector<8x128xf32> to vector<8x32xf32>
    %474 = vector.extract_strided_slice %470 {offsets = [0, 64], sizes = [8, 32], strides = [1, 1]} : vector<8x128xf32> to vector<8x32xf32>
    %475 = vector.extract_strided_slice %471 {offsets = [0, 96], sizes = [8, 32], strides = [1, 1]} : vector<8x128xf32> to vector<8x32xf32>
    %476 = arith.negf %465 : vector<8x128xf32>
    %477 = math.exp %476 : vector<8x128xf32>
    %cst_207 = arith.constant 1.000000e+00 : f32
    %478 = vector.broadcast %cst_207 : f32 to vector<8x128xf32>
    %479 = arith.addf %478, %477 : vector<8x128xf32>
    %480 = arith.divf %478, %479 : vector<8x128xf32>
    %481 = math.tanh %465 : vector<8x128xf32>
    %482 = vector.extract_strided_slice %480 {offsets = [0, 0], sizes = [8, 32], strides = [1, 1]} : vector<8x128xf32> to vector<8x32xf32>
    %483 = vector.extract_strided_slice %480 {offsets = [0, 32], sizes = [8, 32], strides = [1, 1]} : vector<8x128xf32> to vector<8x32xf32>
    %484 = vector.extract_strided_slice %480 {offsets = [0, 64], sizes = [8, 32], strides = [1, 1]} : vector<8x128xf32> to vector<8x32xf32>
    %485 = vector.extract_strided_slice %481 {offsets = [0, 96], sizes = [8, 32], strides = [1, 1]} : vector<8x128xf32> to vector<8x32xf32>
    %c0_208 = arith.constant 0 : index
    %c0_209 = arith.constant 0 : index
    %486 = vector.load %arg11[%c0_208, %c0_209] : memref<8x32xf32, #tpu.memory_space<vmem>>, vector<8x32xf32>
    %487 = arith.mulf %473, %486 : vector<8x32xf32>
    %488 = arith.mulf %472, %475 : vector<8x32xf32>
    %489 = arith.addf %487, %488 : vector<8x32xf32>
    %c0_210 = arith.constant 0 : index
    %c0_211 = arith.constant 0 : index
    %490 = vector.load %arg12[%c0_210, %c0_211] : memref<8x32xf32, #tpu.memory_space<vmem>>, vector<8x32xf32>
    %491 = arith.mulf %483, %490 : vector<8x32xf32>
    %492 = arith.mulf %482, %485 : vector<8x32xf32>
    %493 = arith.addf %491, %492 : vector<8x32xf32>
    %494 = math.tanh %489 : vector<8x32xf32>
    %495 = arith.mulf %474, %494 : vector<8x32xf32>
    %496 = math.tanh %493 : vector<8x32xf32>
    %497 = arith.mulf %484, %496 : vector<8x32xf32>
    %c0_212 = arith.constant 0 : index
    %c0_213 = arith.constant 0 : index
    %498 = vector.load %arg11[%c0_212, %c0_213] : memref<8x32xf32, #tpu.memory_space<vmem>>, vector<8x32xf32>
    tpu.vector_store %arg11[%c0_212, %c0_213], %489 {strides = array<i32>} : memref<8x32xf32, #tpu.memory_space<vmem>>, vector<8x32xf32>,
    %c0_214 = arith.constant 0 : index
    %c0_215 = arith.constant 0 : index
    %499 = vector.load %arg12[%c0_214, %c0_215] : memref<8x32xf32, #tpu.memory_space<vmem>>, vector<8x32xf32>
    tpu.vector_store %arg12[%c0_214, %c0_215], %493 {strides = array<i32>} : memref<8x32xf32, #tpu.memory_space<vmem>>, vector<8x32xf32>,
    %c0_216 = arith.constant 0 : index
    %c0_217 = arith.constant 0 : index
    %500 = vector.load %arg10[%c0_216, %c0_217] : memref<8x64xf32, #tpu.memory_space<vmem>>, vector<8x32xf32>
    tpu.vector_store %arg10[%c0_216, %c0_217], %495 {strides = array<i32>} : memref<8x64xf32, #tpu.memory_space<vmem>>, vector<8x32xf32>,
    %c0_218 = arith.constant 0 : index
    %c32_219 = arith.constant 32 : index
    %501 = vector.load %arg10[%c0_218, %c32_219] : memref<8x64xf32, #tpu.memory_space<vmem>>, vector<8x32xf32>
    tpu.vector_store %arg10[%c0_218, %c32_219], %497 {strides = array<i32>} : memref<8x64xf32, #tpu.memory_space<vmem>>, vector<8x32xf32>,
    %c8_i32_220 = arith.constant 8 : i32
    %502 = arith.muli %c7_i32_197, %c8_i32_220 : i32
    %503 = tpu.assume_multiple %502, 8 : i32
    %504 = arith.index_cast %503 : i32 to index
    %c0_221 = arith.constant 0 : index
    %505 = vector.load %arg13[%504, %c0_221] : memref<64x32xf32, #tpu.memory_space<vmem>>, vector<8x32xf32>
    tpu.vector_store %arg13[%504, %c0_221], %495 {strides = array<i32>} : memref<64x32xf32, #tpu.memory_space<vmem>>, vector<8x32xf32>,
    %c8_i32_222 = arith.constant 8 : i32
    %506 = arith.muli %448, %c8_i32_222 : i32
    %507 = tpu.assume_multiple %506, 8 : i32
    %508 = arith.index_cast %507 : i32 to index
    %c0_223 = arith.constant 0 : index
    %509 = vector.load %arg14[%508, %c0_223] : memref<64x32xf32, #tpu.memory_space<vmem>>, vector<8x32xf32>
    tpu.vector_store %arg14[%508, %c0_223], %497 {strides = array<i32>} : memref<64x32xf32, #tpu.memory_space<vmem>>, vector<8x32xf32>,
    %c8_i32_224 = arith.constant 8 : i32
    %c0_225 = arith.constant 0 : index
    %c0_226 = arith.constant 0 : index
    %510 = vector.load %arg13[%c0_225, %c0_226] : memref<64x32xf32, #tpu.memory_space<vmem>>, vector<64x32xf32>
    %511 = arith.truncf %510 : vector<64x32xf32> to vector<64x32xbf16>
    %c0_227 = arith.constant 0 : index
    %c0_228 = arith.constant 0 : index
    %512 = vector.load %arg5[%c0_227, %c0_228] : memref<32x128xbf16, #tpu.memory_space<vmem>>, vector<32x128xbf16>
    %cst_229 = arith.constant dense<0.000000e+00> : vector<64x128xf32>
    %513 = tpu.matmul %511, %512, %cst_229 {dimension_numbers = #tpu.dot_dimension_numbers<[1], [0], [0], [1], [0, 0, 1, 1], [], []>} : vector<64x32xbf16>, vector<32x128xbf16>, vector<64x128xf32> -> vector<64x128xf32>
    %c0_230 = arith.constant 0 : index
    %c0_231 = arith.constant 0 : index
    %514 = vector.load %arg14[%c0_230, %c0_231] : memref<64x32xf32, #tpu.memory_space<vmem>>, vector<64x32xf32>
    %515 = arith.truncf %514 : vector<64x32xf32> to vector<64x32xbf16>
    %c0_232 = arith.constant 0 : index
    %c0_233 = arith.constant 0 : index
    %516 = vector.load %arg6[%c0_232, %c0_233] : memref<32x128xbf16, #tpu.memory_space<vmem>>, vector<32x128xbf16>
    %cst_234 = arith.constant dense<0.000000e+00> : vector<64x128xf32>
    %517 = tpu.matmul %515, %516, %cst_234 {dimension_numbers = #tpu.dot_dimension_numbers<[1], [0], [0], [1], [0, 0, 1, 1], [], []>} : vector<64x32xbf16>, vector<32x128xbf16>, vector<64x128xf32> -> vector<64x128xf32>
    %518 = arith.addf %513, %517 : vector<64x128xf32>
    %c0_235 = arith.constant 0 : index
    %c0_236 = arith.constant 0 : index
    %519 = vector.load %arg7[%c0_235, %c0_236] : memref<1x128xf32, #tpu.memory_space<vmem>>, vector<1x128xf32>
    %520 = vector.broadcast %519 : vector<1x128xf32> to vector<64x128xf32>
    %521 = arith.addf %518, %520 : vector<64x128xf32>
    %c0_237 = arith.constant 0 : index
    %c0_238 = arith.constant 0 : index
    %522 = vector.load %arg8[%c0_237, %c0_238] : memref<64x128xf32, #tpu.memory_space<vmem>>, vector<64x128xf32>
    tpu.vector_store %arg8[%c0_237, %c0_238], %521 {strides = array<i32>} : memref<64x128xf32, #tpu.memory_space<vmem>>, vector<64x128xf32>,
    return
  }
  func.func @transform_0(%arg0: i32) -> (i32, i32) {
    %c0_i32 = arith.constant 0 : i32
    %c0_i32_0 = arith.constant 0 : i32
    %c0_i32_1 = arith.constant 0 : i32
    return %c0_i32, %c0_i32_0 : i32, i32
  }
  func.func @transform_1(%arg0: i32) -> (i32, i32) {
    %c0_i32 = arith.constant 0 : i32
    %c0_i32_0 = arith.constant 0 : i32
    %c0_i32_1 = arith.constant 0 : i32
    return %c0_i32, %c0_i32_0 : i32, i32
  }
  func.func @transform_2(%arg0: i32) -> (i32, i32) {
    %c0_i32 = arith.constant 0 : i32
    %c0_i32_0 = arith.constant 0 : i32
    %c0_i32_1 = arith.constant 0 : i32
    return %c0_i32, %c0_i32_0 : i32, i32
  }
  func.func @transform_3(%arg0: i32) -> (i32, i32) {
    %c0_i32 = arith.constant 0 : i32
    %c0_i32_0 = arith.constant 0 : i32
    %c0_i32_1 = arith.constant 0 : i32
    return %c0_i32, %c0_i32_0 : i32, i32
  }
  func.func @transform_4(%arg0: i32) -> (i32, i32) {
    %c0_i32 = arith.constant 0 : i32
    %c0_i32_0 = arith.constant 0 : i32
    %c0_i32_1 = arith.constant 0 : i32
    return %c0_i32, %c0_i32_0 : i32, i32
  }
  func.func @transform_5(%arg0: i32) -> (i32, i32) {
    %c0_i32 = arith.constant 0 : i32
    %c0_i32_0 = arith.constant 0 : i32
    %c0_i32_1 = arith.constant 0 : i32
    return %c0_i32, %c0_i32_0 : i32, i32
  }
  func.func @transform_6(%arg0: i32) -> (i32, i32) {
    %c0_i32 = arith.constant 0 : i32
    %c0_i32_0 = arith.constant 0 : i32
    %c0_i32_1 = arith.constant 0 : i32
    return %c0_i32, %c0_i32_0 : i32, i32
  }
  func.func @transform_7(%arg0: i32) -> (i32, i32) {
    %c0_i32 = arith.constant 0 : i32
    %c0_i32_0 = arith.constant 0 : i32
    %c0_i32_1 = arith.constant 0 : i32
    return %c0_i32, %c0_i32_0 : i32, i32
  }
}

</mosaic_0001>

<bundles_post_ra>
// kernel: tpu_custom_call.1
= control target key start
LH: loop header
LB: loop body
LE: loop exit
PB: predicated region body
PF: predicated region fallthrough
CT: control target
= control target key end

     0   :  { %12 = vsyncpa [#allocation9], 0  ;;  %s2387_s0 = inlined_call_operand.vmem [shape: bf16[64,16], index: 0, kind: input, shape index: {}]   ;;  %s2388_s1 = inlined_call_operand.vmem [shape: bf16[16,256], index: 1, kind: input, shape index: {}]   ;;  %s2389_s2 = inlined_call_operand.vmem [shape: f32[1,256], index: 2, kind: input, shape index: {}]   ;;  %s2390_s3 = inlined_call_operand.hbm [shape: bf16[64,256], index: 3, kind: input, shape index: {}]   ;;  %s2391_s4 = inlined_call_operand.vmem [shape: bf16[32,128], index: 4, kind: input, shape index: {}]   ;;  %s2392_s5 = inlined_call_operand.vmem [shape: bf16[32,128], index: 5, kind: input, shape index: {}]   ;;  %s2393_s6 = inlined_call_operand.vmem [shape: f32[1,128], index: 6, kind: input, shape index: {}]   ;;  %s2394_s7 = inlined_call_operand.hbm [shape: f32[64,128], index: 7, kind: output, shape index: {}]  }
   0x1   :  { %13 = vsyncpa [#allocation10], 0  ;;  %s1918_s24 = smov [#allocation8]   ;;  %s1870_s28 = scalar_lea.hbm %s2390_s3, 1024 }
   0x2   :  { %s25_s25 = sshll.u32 %s1918_s24, 4  ;;  %p1871_p0 = scmp.ne.s32.totalorder %s2390_s3, %s1870_s28  ;;  %s26_s25 = int_to_ptr.vmem [resolvable:$true] %s25_s25 }
   0x3   :  { %p1874_p1 = scmp.lt.u32.totalorder %s1870_s28, %s2390_s3 }
   0x5   :  { %p1876_p2 = pnand %p1874_p1, %p1871_p0 }
   0x7   :  { %1879 = shalt.err (!%p1876_p2)
}
   0x8   :  { %s1880_s10 = scalar_lea.vmem %s26_s25, 1024  ;;  %p1885_p4 = scmp.lt.s32.totalorder %s26_s25, %s26_s25 }
   0x9   :  { %p1881_p3 = scmp.ne.s32.totalorder %s26_s25, %s1880_s10  ;;  %p1886_p5 = scmp.lt.s32.totalorder %s1880_s10, %s1880_s10 }
   0xb   :  { %p1887_p6 = por %p1886_p5, %p1885_p4 }
   0xd   :  { %p1888_p7 = pnand %p1887_p6, %p1881_p3 }
   0xf   :  { %1891 = shalt.err (!%p1888_p7)
}
  0x10   :  { %s1919_s11 = smov 128   ;;  %s1920_s12 = smov 8  }
  0x11   :  { %31 = dma.hbm_to_vmem [thread:$0]  %s2390_s3, 1024, %s26_s25, [#allocation9], %s1919_s11, %s1919_s11, %s1920_s12  }
  0x12   :  { %1914 = dma.done.wait [#allocation9], 1024  }
  0x13   :  { %1915 = vsyncadd [#allocation9], 4294966272  ;;  %vm196_vm0 = vcmask 523264   ;;  %v1921_v0 = vmov 0   ;;  %v1922_v1 = vmov 0.0   ;;  %vm198_vm1 = vcmask 261120  }
  0x14   :  { %159 = vmatprep.mubr.bf16.mxu1 %v1921_v0  ;;  %139 = vmatprep.mubr.bf16.mxu0 %v1921_v0  ;;  %197 = vst.msk [vmem:[#allocation3] sm:$0xff] %vm196_vm0, %v1922_v1  ;;  %v1719_v2 = vld [vmem:[%s2388_s1 + $0x4] ss:$8 sps:$4 sm:$0xff]   ;;  %v1721_v3 = vld [vmem:[%s2388_s1] ss:$8 sps:$4 sm:$0xff]   ;;  %v1722_v4 = vld [vmem:[%s2387_s0 + $0x10] sm:$0xff]   ;;  %v54_v19 = vlaneseq }
  0x15   :  { %199 = vst.msk [vmem:[#allocation4] sm:$0xff] %vm198_vm1, %v1922_v1  ;;  %200 = vst.msk [vmem:[#allocation5] sm:$0xff] %vm198_vm1, %v1922_v1  ;;  %1700 = vmatprep.subr.bf16.mxu1 %v1719_v2  ;;  %107 = vmatprep.subr.bf16.mxu0 %v1719_v2  ;;  %vm94_vm2 = vcmask 130048   ;;  %v1996_v5 = vld [vmem:[#allocation8 + $0x4] ss:$8 sps:$4 sm:$0xff]   ;;  %v1733_v10 = vld [vmem:[%s2387_s0] sm:$0xff]  }
  0x16   :  { %1701 = vmatpush1.bf16.msra.mxu1 %v1721_v3  ;;  %v1998_v6 = vld [vmem:[#allocation8] ss:$8 sps:$4 sm:$0xff]   ;;  %108 = vmatpush1.bf16.msra.mxu0 %v1721_v3  ;;  %v2000_v7 = vld [vmem:[#allocation8 + $0x14] ss:$8 sps:$4 sm:$0xff]   ;;  %v2005_v8 = vld [vmem:[#allocation8 + $0x10] ss:$8 sps:$4 sm:$0xff]  }
  0x17   :  { %254 = vmatprep.subr.bf16.mxu1 %v1996_v5  ;;  %536 = vmatprep.subr.bf16.mxu0 %v1996_v5  ;;  %v2009_v9 = vld [vmem:[#allocation8 + $0x24] ss:$8 sps:$4 sm:$0xff]   ;;  %v1729_v11 = vld [vmem:[%s2387_s0 + $0x18] sm:$0xff]   ;;  %v2018_v12 = vld [vmem:[#allocation8 + $0x20] ss:$8 sps:$4 sm:$0xff]   ;;  %s1923_s23 = smov 32  }
  0x18   :  { %v2021_v13 = vld [vmem:[#allocation8 + $0x34] ss:$8 sps:$4 sm:$0xff]   ;;  %v2031_v16 = vld [vmem:[#allocation8 + $0x30] ss:$8 sps:$4 sm:$0xff]   ;;  %v55_v23 = vshrl.u32 %v54_v19, 7  ;;  %s1925_s26 = smov 96  }
  0x19   :  { %1617 = vmatmul.mubr.msk.bf16.vlgmr.msra.gmra.mrb[0].mxu1 %vm94_vm2, %v1722_v4  ;;  %1615 = vmatmul.mubr.msk.bf16.vlgmr.msra.gmra.mrb[0].mxu0 %vm94_vm2, %v1733_v10  ;;  %v52_v30 = vld [vmem:[%s2389_s2] sm:$0x3]  ;;  %s1924_s2 = smov 64   ;;  %vm382_vm3 = vcmask 523520   ;;  %s1926_s15 = smov [#allocation11]  }
  0x1a   :  { %255 = vmatpush1.bf16.msra.mxu1 %v1998_v6  ;;  %169 = vmatprep.mubr.bf16.mxu1 %v1921_v0  ;;  %v56_v28 = vsub.s32 0, %v55_v23  ;;  %v60_v33 = vsub.s32 1, %v55_v23  ;;  %s1590_s16 = sshll.u32 %s1926_s15, 4  ;;  %s1591_s16 = int_to_ptr.vmem [resolvable:$true] %s1590_s16 }
  0x1b   :  { %256 = vmatprep.subr.bf16.mxu1 %v2000_v7  ;;  %537 = vmatpush1.bf16.msra.mxu0 %v1998_v6  ;;  %v209_v17 = vld [vmem:[#allocation3] sm:$0xff]  ;;  %p1897_p9 = scmp.lt.s32.totalorder %s1591_s16, %s1591_s16 }
  0x1c   :  { %v319_v14 = vld [vmem:[#allocation4] sm:$0xff]  ;;  %v335_v15 = vld [vmem:[#allocation5] sm:$0xff]  ;;  %538 = vmatprep.subr.bf16.mxu0 %v2000_v7  ;;  %149 = vmatprep.mubr.bf16.mxu0 %v1921_v0  ;;  %v210_v18 = vpack.c.bf16 %v209_v17, %v209_v17  ;;  %v2077_v35 = vrot.slane %v52_v30, %v56_v28  ;;  %v2080_v38 = vrot.slane %v52_v30, %v60_v33 }
  0x1d   :  { %321 = vrot.lane.b32.xlu1 %v319_v14, %s1923_s23 }
  0x1e   :  { %257 = vmatpush1.bf16.msra.mxu1 %v2005_v8 }
  0x1f   :  { %258 = vmatprep.subr.bf16.mxu1 %v2009_v9  ;;  %539 = vmatpush1.bf16.msra.mxu0 %v2005_v8 }
  0x20   :  { %540 = vmatprep.subr.bf16.mxu0 %v2009_v9 }
  0x21   :  { %1618 = vmatmul.mubr.msk.bf16.gmra.mrb[4].mxu1 %vm94_vm2, %v1729_v11  ;;  %337 = vrot.lane.b32.xlu1 %v335_v15, %s1923_s23 }
  0x22   :  { %259 = vmatpush1.bf16.msra.mxu1 %v2018_v12  ;;  %286 = vmatprep.mubr.bf16.mxu1 %v1921_v0 }
  0x23   :  { %260 = vmatprep.subr.bf16.mxu1 %v2021_v13  ;;  %541 = vmatpush1.bf16.msra.mxu0 %v2018_v12 }
  0x24   :  { %542 = vmatprep.subr.bf16.mxu0 %v2021_v13 }
  0x26   :  { %261 = vmatpush1.bf16.msra.mxu1 %v2031_v16 }
  0x27   :  { %395 = vmatprep.subr.bf16.mxu1 %v1996_v5  ;;  %543 = vmatpush1.bf16.msra.mxu0 %v2031_v16 }
  0x28   :  { %818 = vmatprep.subr.bf16.mxu0 %v1996_v5 }
  0x29   :  { %1627 = vmatmul.mubr.msk.bf16.vlgmr.msra.gmra.mrb[8].mxu1 %vm196_vm0, %v210_v18 }
  0x2a   :  { %396 = vmatpush1.bf16.msra.mxu1 %v1998_v6  ;;  %427 = vmatprep.mubr.bf16.mxu1 %v1921_v0 }
  0x2b   :  { %397 = vmatprep.subr.bf16.mxu1 %v2000_v7 }
  0x2e   :  { %398 = vmatpush1.bf16.msra.mxu1 %v2005_v8 }
  0x2f   :  { %399 = vmatprep.subr.bf16.mxu1 %v2009_v9 }
  0x32   :  { %400 = vmatpush1.bf16.msra.mxu1 %v2018_v12 }
  0x33   :  { %401 = vmatprep.subr.bf16.mxu1 %v2021_v13 }
  0x36   :  { %402 = vmatpush1.bf16.msra.mxu1 %v2031_v16 }
  0x37   :  { %677 = vmatprep.subr.bf16.mxu1 %v1996_v5 }
  0x8f   :  { %v322_v60 = vpop.permute.xlu1 %321 }
  0x93   :  { %v338_v62 = vpop.permute.xlu1 %337 }
  0xec   :  { %v2054_v20 = vpop.f32.mrb[0].mxu1  ;;  %v141_v25 = vpop.f32.mrb[0].mxu0 }
  0xed   :  { %v2056_v21 = vpop.f32.mrb[1].mxu1  ;;  %v2062_v26 = vpop.f32.mrb[1].mxu0  ;;  %v142_v37 = vadd.f32 %v141_v25, %v2077_v35 }
  0xee   :  { %v2058_v22 = vpop.f32.mrb[2].mxu1  ;;  %v2064_v27 = vpop.f32.mrb[2].mxu0 }
  0xef   :  { %v2060_v24 = vpop.f32.mrb[3].mxu1  ;;  %v2066_v29 = vpop.f32.mrb[3].mxu0 }
  0xf4   :  { %v2071_v31 = vpop.f32.mrb[4].mxu1 }
  0xf5   :  { %v2073_v32 = vpop.f32.mrb[5].mxu1 }
  0xf6   :  { %v2075_v34 = vpop.f32.mrb[6].mxu1 }
  0xf7   :  { %v177_v36 = vpop.f32.mrb[7].mxu1 }
  0xf8   :  { %v178_v39 = vadd.f32 %v177_v36, %v2080_v38  ;;  %v146_v36 = vadd.f32 %v2064_v27, %v2077_v35 }
  0xfc   :  { %v288_v40 = vpop.f32.mrb[8].mxu1 }
  0xfd   :  { %v303_v41 = vadd.f32 %v288_v40, %v142_v37  ;;  %v290_v42 = vpop.f32.mrb[9].mxu1  ;;  %v174_v37 = vadd.f32 %v2073_v32, %v2080_v38 }
  0xfe   :  { %v304_v43 = vadd.f32 %v290_v42, %v178_v39  ;;  %v292_v44 = vpop.f32.mrb[10].mxu1 }
  0xff   :  { %1742 = vtanh.f32 %v303_v41  ;;  %v293_v45 = vpop.f32.mrb[11].mxu1  ;;  %v1628_v48 = vmul.f32 -1.442695, %v303_v41 }
 0x100   :  { %1744 = vtanh.f32 %v304_v43  ;;  %v1629_v49 = vmul.f32 -1.442695, %v304_v43 }
 0x101   :  { %1746 = vpow2.f32 %v1628_v48 }
 0x102   :  { %1748 = vpow2.f32 %v1629_v49 }
 0x109   :  { %v1743_v46 = vpop.eup %1742 }
 0x10a   :  { %326 = vrot.lane.b32.xlu0 %v1743_v46, %s1923_s23  ;;  %v1745_v47 = vpop.eup %1744 }
 0x10b   :  { %v1747_v50 = vpop.eup %1746 }
 0x10c   :  { %v308_v51 = vadd.f32 1.0, %v1747_v50  ;;  %v1749_v52 = vpop.eup %1748 }
 0x10d   :  { %v315_v53 = vadd.f32 1.0, %v1749_v52 }
 0x10e   :  { %342 = vrot.lane.b32.xlu0 %v1745_v47, %s1923_s23  ;;  %1750 = vrcp.f32 %v308_v51 }
 0x10f   :  { %1752 = vrcp.f32 %v315_v53 }
 0x118   :  { %v1751_v54 = vpop.eup %1750 }
 0x119   :  { %v1753_v57 = vpop.eup %1752  ;;  %v324_v61 = vmul.f32 %v1751_v54, %v322_v60 }
 0x11a   :  { %v340_v2 = vmul.f32 %v1753_v57, %v338_v62 }
 0x17c   :  { %v327_v55 = vpop.permute.xlu0 %326 }
 0x17d   :  { %v329_v56 = vmul.f32 %v1751_v54, %v327_v55 }
 0x17f   :  { %331 = vrot.lane.b32.xlu0 %v329_v56, %s1923_s23 }
 0x180   :  { %v343_v58 = vpop.permute.xlu0 %342 }
 0x181   :  { %v345_v59 = vmul.f32 %v1753_v57, %v343_v58 }
 0x183   :  { %347 = vrot.lane.b32.xlu1 %v345_v59, %s1923_s23 }
 0x1f1   :  { %v332_v63 = vpop.permute.xlu0 %331 }
 0x1f2   :  { %v334_v1 = vadd.f32 %v332_v63, %v324_v61 }
 0x1f4   :  { %1754 = vtanh.f32 %v334_v1 }
 0x1f5   :  { %v348_v3 = vpop.permute.xlu1 %347 }
 0x1f6   :  { %v350_v4 = vadd.f32 %v348_v3, %v340_v2 }
 0x1f8   :  { %1756 = vtanh.f32 %v350_v4 }
 0x1fe   :  { %v1755_v10 = vpop.eup %1754 }
 0x1ff   :  { %353 = vrot.lane.b32.xlu0 %v1755_v10, %s1923_s23 }
 0x202   :  { %v1757_v11 = vpop.eup %1756 }
 0x203   :  { %359 = vrot.lane.b32.xlu1 %v1757_v11, %s1923_s23  ;;  %v1737_v11 = vld [vmem:[%s2387_s0 + $0x8] sm:$0xff]  }
 0x204   :  { %1616 = vmatmul.mubr.msk.bf16.gmra.mrb[4].mxu0 %vm94_vm2, %v1737_v11 }
 0x205   :  { %568 = vmatprep.mubr.bf16.mxu0 %v1921_v0 }
 0x271   :  { %v354_v14 = vpop.permute.xlu0 %353 }
 0x272   :  { %v356_v15 = vmul.f32 %v1751_v54, %v354_v14 }
 0x274   :  { %374 = vrot.lane.b32.xlu0 %v356_v15, %s1924_s2 }
 0x275   :  { %v360_v17 = vpop.permute.xlu1 %359 }
 0x276   :  { %v2090_v18 = vmul.f32 %v1753_v57, %v360_v17 }
 0x278   :  { %379 = vrot.lane.b32.xlu1 %v2090_v18, %s1925_s26  ;;  %364 = vrot.lane.b32.xlu0 %v334_v1, %s1925_s26 }
 0x27c   :  { %369 = vrot.lane.b32.xlu1 %v350_v4, %s1925_s26 }
 0x2e6   :  { %v375_v19 = vpop.permute.xlu0 %374 }
 0x2e7   :  { %377 = vst.msk [vmem:[#allocation3] sm:$0xff] %vm198_vm1, %v375_v19  ;;  %384 = vst.msk [vmem:[#allocation6] sm:$0xff] %vm198_vm1, %v375_v19 }
 0x2ea   :  { %v380_v23 = vpop.permute.xlu1 %379  ;;  %v365_v25 = vpop.permute.xlu0 %364 }
 0x2eb   :  { %383 = vst.msk [vmem:[#allocation3] sm:$0xff] %vm382_vm3, %v380_v23 }
 0x2ec   :  { %367 = vst.msk [vmem:[#allocation4] sm:$0xff] %vm198_vm1, %v365_v25 }
 0x2ee   :  { %v370_v28 = vpop.permute.xlu1 %369 }
 0x2ef   :  { %372 = vst.msk [vmem:[#allocation5] sm:$0xff] %vm198_vm1, %v370_v28 }
 0x2f2   :  { %v390_v30 = vld [vmem:[#allocation3] sm:$0xff] }
 0x2f3   :  { %v391_v33 = vpack.c.bf16 %v390_v30, %v390_v30  ;;  %v460_v47 = vld [vmem:[#allocation4] sm:$0xff] }
 0x2f5   :  { %1630 = vmatmul.mubr.msk.bf16.vlgmr.msra.gmra.mrb[12].mxu1 %vm196_vm0, %v391_v33 }
 0x2f6   :  { %678 = vmatpush1.bf16.msra.mxu1 %v1998_v6  ;;  %709 = vmatprep.mubr.bf16.mxu1 %v1921_v0  ;;  %v476_v27 = vld [vmem:[#allocation5] sm:$0xff] }
 0x2f7   :  { %679 = vmatprep.subr.bf16.mxu1 %v2000_v7 }
 0x2fa   :  { %680 = vmatpush1.bf16.msra.mxu1 %v2005_v8 }
 0x2fb   :  { %681 = vmatprep.subr.bf16.mxu1 %v2009_v9 }
 0x2fe   :  { %682 = vmatpush1.bf16.msra.mxu1 %v2018_v12 }
 0x2ff   :  { %683 = vmatprep.subr.bf16.mxu1 %v2021_v13 }
 0x302   :  { %684 = vmatpush1.bf16.msra.mxu1 %v2031_v16 }
 0x303   :  { %953 = vmatprep.subr.bf16.mxu1 %v1996_v5 }
 0x3c8   :  { %v429_v39 = vpop.f32.mrb[12].mxu1 }
 0x3c9   :  { %v444_v40 = vadd.f32 %v429_v39, %v146_v36  ;;  %v431_v41 = vpop.f32.mrb[13].mxu1 }
 0x3ca   :  { %v445_v42 = vadd.f32 %v431_v41, %v174_v37  ;;  %v433_v43 = vpop.f32.mrb[14].mxu1  ;;  %v151_v37 = vpop.f32.mrb[4].mxu0 }
 0x3cb   :  { %1758 = vtanh.f32 %v444_v40  ;;  %v434_v44 = vpop.f32.mrb[15].mxu1  ;;  %v1631_v32 = vmul.f32 -1.442695, %v444_v40  ;;  %v2150_v39 = vpop.f32.mrb[5].mxu0  ;;  %v168_v43 = vadd.f32 %v2060_v24, %v2080_v38 }
 0x3cc   :  { %1760 = vtanh.f32 %v445_v42  ;;  %v1632_v48 = vmul.f32 -1.442695, %v445_v42  ;;  %v2152_v40 = vpop.f32.mrb[6].mxu0  ;;  %v152_v42 = vadd.f32 %v151_v37, %v2077_v35 }
 0x3cd   :  { %1762 = vpow2.f32 %v1631_v32  ;;  %v2154_v41 = vpop.f32.mrb[7].mxu0 }
 0x3ce   :  { %1764 = vpow2.f32 %v1632_v48 }
 0x3d5   :  { %v1759_v45 = vpop.eup %1758 }
 0x3d6   :  { %v1761_v46 = vpop.eup %1760  ;;  %467 = vrot.lane.b32.xlu0 %v1759_v45, %s1923_s23 }
 0x3d7   :  { %483 = vrot.lane.b32.xlu1 %v1761_v46, %s1923_s23  ;;  %v1763_v49 = vpop.eup %1762 }
 0x3d8   :  { %v1765_v50 = vpop.eup %1764  ;;  %v449_v51 = vadd.f32 1.0, %v1763_v49 }
 0x3d9   :  { %v456_v52 = vadd.f32 1.0, %v1765_v50 }
 0x3da   :  { %462 = vrot.lane.b32.xlu0 %v460_v47, %s1923_s23  ;;  %1766 = vrcp.f32 %v449_v51 }
 0x3db   :  { %478 = vrot.lane.b32.xlu1 %v476_v27, %s1923_s23  ;;  %1768 = vrcp.f32 %v456_v52 }
 0x3e4   :  { %v1767_v53 = vpop.eup %1766 }
 0x3e5   :  { %v1769_v55 = vpop.eup %1768 }
 0x448   :  { %v468_v54 = vpop.permute.xlu0 %467 }
 0x449   :  { %v470_v56 = vmul.f32 %v1767_v53, %v468_v54  ;;  %v484_v57 = vpop.permute.xlu1 %483 }
 0x44a   :  { %v486_v58 = vmul.f32 %v1769_v55, %v484_v57 }
 0x44b   :  { %472 = vrot.lane.b32.xlu0 %v470_v56, %s1923_s23 }
 0x44c   :  { %488 = vrot.lane.b32.xlu1 %v486_v58, %s1923_s23  ;;  %v463_v59 = vpop.permute.xlu0 %462 }
 0x44d   :  { %v479_v60 = vpop.permute.xlu1 %478  ;;  %v465_v61 = vmul.f32 %v1767_v53, %v463_v59 }
 0x44e   :  { %v481_v62 = vmul.f32 %v1769_v55, %v479_v60 }
 0x4bd   :  { %v473_v63 = vpop.permute.xlu0 %472 }
 0x4be   :  { %v475_v1 = vadd.f32 %v473_v63, %v465_v61  ;;  %v489_v2 = vpop.permute.xlu1 %488 }
 0x4bf   :  { %v491_v3 = vadd.f32 %v489_v2, %v481_v62 }
 0x4c0   :  { %1770 = vtanh.f32 %v475_v1 }
 0x4c1   :  { %1772 = vtanh.f32 %v491_v3 }
 0x4ca   :  { %v1771_v4 = vpop.eup %1770 }
 0x4cb   :  { %v1773_v10 = vpop.eup %1772  ;;  %494 = vrot.lane.b32.xlu0 %v1771_v4, %s1923_s23 }
 0x4cc   :  { %500 = vrot.lane.b32.xlu1 %v1773_v10, %s1923_s23 }
 0x53d   :  { %v495_v14 = vpop.permute.xlu0 %494 }
 0x53e   :  { %v497_v15 = vmul.f32 %v1767_v53, %v495_v14  ;;  %v501_v17 = vpop.permute.xlu1 %500 }
 0x53f   :  { %v2128_v19 = vmul.f32 %v1769_v55, %v501_v17 }
 0x540   :  { %515 = vrot.lane.b32.xlu0 %v497_v15, %s1924_s2 }
 0x541   :  { %520 = vrot.lane.b32.xlu1 %v2128_v19, %s1925_s26 }
 0x544   :  { %505 = vrot.lane.b32.xlu0 %v475_v1, %s1925_s26 }
 0x545   :  { %510 = vrot.lane.b32.xlu1 %v491_v3, %s1925_s26 }
 0x5b2   :  { %v516_v23 = vpop.permute.xlu0 %515 }
 0x5b3   :  { %518 = vst.msk [vmem:[#allocation3] sm:$0xff] %vm198_vm1, %v516_v23  ;;  %525 = vst.msk [vmem:[#allocation6 + $0x8] sm:$0xff] %vm198_vm1, %v516_v23  ;;  %v521_v25 = vpop.permute.xlu1 %520 }
 0x5b4   :  { %523 = vst.msk [vmem:[#allocation3] sm:$0xff] %vm382_vm3, %v521_v25 }
 0x5b6   :  { %v506_v28 = vpop.permute.xlu0 %505 }
 0x5b7   :  { %508 = vst.msk [vmem:[#allocation4] sm:$0xff] %vm198_vm1, %v506_v28  ;;  %v511_v30 = vpop.permute.xlu1 %510 }
 0x5b8   :  { %513 = vst.msk [vmem:[#allocation5] sm:$0xff] %vm198_vm1, %v511_v30 }
 0x5bb   :  { %v531_v33 = vld [vmem:[#allocation3] sm:$0xff] }
 0x5bc   :  { %v532_v36 = vpack.c.bf16 %v531_v33, %v531_v33 }
 0x5be   :  { %1633 = vmatmul.mubr.msk.bf16.vlgmr.msra.gmra.mrb[8].mxu0 %vm196_vm0, %v532_v36  ;;  %v601_v50 = vld [vmem:[#allocation4] sm:$0xff] }
 0x5bf   :  { %819 = vmatpush1.bf16.msra.mxu0 %v1998_v6  ;;  %850 = vmatprep.mubr.bf16.mxu0 %v1921_v0  ;;  %v617_v51 = vld [vmem:[#allocation5] sm:$0xff] }
 0x5c0   :  { %820 = vmatprep.subr.bf16.mxu0 %v2000_v7 }
 0x5c3   :  { %821 = vmatpush1.bf16.msra.mxu0 %v2005_v8 }
 0x5c4   :  { %822 = vmatprep.subr.bf16.mxu0 %v2009_v9 }
 0x5c7   :  { %823 = vmatpush1.bf16.msra.mxu0 %v2018_v12 }
 0x5c8   :  { %824 = vmatprep.subr.bf16.mxu0 %v2021_v13 }
 0x5cb   :  { %825 = vmatpush1.bf16.msra.mxu0 %v2031_v16 }
 0x5cc   :  { %1088 = vmatprep.subr.bf16.mxu0 %v1996_v5 }
 0x691   :  { %v570_v44 = vpop.f32.mrb[8].mxu0 }
 0x692   :  { %v585_v45 = vadd.f32 %v570_v44, %v152_v42  ;;  %v572_v46 = vpop.f32.mrb[9].mxu0 }
 0x693   :  { %v586_v47 = vadd.f32 %v572_v46, %v168_v43  ;;  %v574_v27 = vpop.f32.mrb[10].mxu0  ;;  %v164_v46 = vadd.f32 %v2056_v21, %v2080_v38 }
 0x694   :  { %1774 = vtanh.f32 %v585_v45  ;;  %v575_v32 = vpop.f32.mrb[11].mxu0  ;;  %v1634_v24 = vmul.f32 -1.442695, %v585_v45  ;;  %v156_v45 = vadd.f32 %v2152_v40, %v2077_v35 }
 0x695   :  { %1776 = vtanh.f32 %v586_v47  ;;  %v1635_v52 = vmul.f32 -1.442695, %v586_v47 }
 0x696   :  { %1778 = vpow2.f32 %v1634_v24 }
 0x697   :  { %1780 = vpow2.f32 %v1635_v52 }
 0x69e   :  { %v1775_v48 = vpop.eup %1774 }
 0x69f   :  { %v1777_v49 = vpop.eup %1776  ;;  %608 = vrot.lane.b32.xlu0 %v1775_v48, %s1923_s23 }
 0x6a0   :  { %624 = vrot.lane.b32.xlu1 %v1777_v49, %s1923_s23  ;;  %v1779_v53 = vpop.eup %1778 }
 0x6a1   :  { %v1781_v54 = vpop.eup %1780  ;;  %v590_v55 = vadd.f32 1.0, %v1779_v53 }
 0x6a2   :  { %v597_v56 = vadd.f32 1.0, %v1781_v54 }
 0x6a3   :  { %603 = vrot.lane.b32.xlu0 %v601_v50, %s1923_s23  ;;  %1782 = vrcp.f32 %v590_v55 }
 0x6a4   :  { %619 = vrot.lane.b32.xlu1 %v617_v51, %s1923_s23  ;;  %1784 = vrcp.f32 %v597_v56 }
 0x6ad   :  { %v1783_v57 = vpop.eup %1782 }
 0x6ae   :  { %v1785_v59 = vpop.eup %1784 }
 0x711   :  { %v609_v58 = vpop.permute.xlu0 %608 }
 0x712   :  { %v611_v60 = vmul.f32 %v1783_v57, %v609_v58  ;;  %v625_v61 = vpop.permute.xlu1 %624 }
 0x713   :  { %v627_v62 = vmul.f32 %v1785_v59, %v625_v61 }
 0x714   :  { %613 = vrot.lane.b32.xlu0 %v611_v60, %s1923_s23 }
 0x715   :  { %629 = vrot.lane.b32.xlu1 %v627_v62, %s1923_s23  ;;  %v604_v63 = vpop.permute.xlu0 %603 }
 0x716   :  { %v620_v1 = vpop.permute.xlu1 %619  ;;  %v606_v2 = vmul.f32 %v1783_v57, %v604_v63 }
 0x717   :  { %v622_v3 = vmul.f32 %v1785_v59, %v620_v1 }
 0x786   :  { %v614_v4 = vpop.permute.xlu0 %613 }
 0x787   :  { %v616_v10 = vadd.f32 %v614_v4, %v606_v2  ;;  %v630_v11 = vpop.permute.xlu1 %629 }
 0x788   :  { %v632_v14 = vadd.f32 %v630_v11, %v622_v3 }
 0x789   :  { %1786 = vtanh.f32 %v616_v10 }
 0x78a   :  { %1788 = vtanh.f32 %v632_v14 }
 0x793   :  { %v1787_v15 = vpop.eup %1786 }
 0x794   :  { %v1789_v17 = vpop.eup %1788  ;;  %635 = vrot.lane.b32.xlu0 %v1787_v15, %s1923_s23 }
 0x795   :  { %641 = vrot.lane.b32.xlu1 %v1789_v17, %s1923_s23 }
 0x806   :  { %v636_v23 = vpop.permute.xlu0 %635 }
 0x807   :  { %v638_v25 = vmul.f32 %v1783_v57, %v636_v23  ;;  %v642_v28 = vpop.permute.xlu1 %641 }
 0x808   :  { %v2167_v30 = vmul.f32 %v1785_v59, %v642_v28 }
 0x809   :  { %656 = vrot.lane.b32.xlu0 %v638_v25, %s1924_s2 }
 0x80a   :  { %661 = vrot.lane.b32.xlu1 %v2167_v30, %s1925_s26 }
 0x80d   :  { %646 = vrot.lane.b32.xlu0 %v616_v10, %s1925_s26 }
 0x80e   :  { %651 = vrot.lane.b32.xlu1 %v632_v14, %s1925_s26 }
 0x87b   :  { %v657_v33 = vpop.permute.xlu0 %656 }
 0x87c   :  { %659 = vst.msk [vmem:[#allocation3] sm:$0xff] %vm198_vm1, %v657_v33  ;;  %666 = vst.msk [vmem:[#allocation6 + $0x10] sm:$0xff] %vm198_vm1, %v657_v33  ;;  %v662_v36 = vpop.permute.xlu1 %661 }
 0x87d   :  { %664 = vst.msk [vmem:[#allocation3] sm:$0xff] %vm382_vm3, %v662_v36 }
 0x87f   :  { %v647_v37 = vpop.permute.xlu0 %646 }
 0x880   :  { %649 = vst.msk [vmem:[#allocation4] sm:$0xff] %vm198_vm1, %v647_v37  ;;  %v652_v42 = vpop.permute.xlu1 %651 }
 0x881   :  { %654 = vst.msk [vmem:[#allocation5] sm:$0xff] %vm198_vm1, %v652_v42 }
 0x884   :  { %v672_v43 = vld [vmem:[#allocation3] sm:$0xff] }
 0x885   :  { %v673_v44 = vpack.c.bf16 %v672_v43, %v672_v43 }
 0x887   :  { %1636 = vmatmul.mubr.msk.bf16.vlgmr.msra.gmra.mrb[16].mxu1 %vm196_vm0, %v673_v44 }
 0x888   :  { %954 = vmatpush1.bf16.msra.mxu1 %v1998_v6  ;;  %985 = vmatprep.mubr.bf16.mxu1 %v1921_v0  ;;  %v758_v40 = vld [vmem:[#allocation5] sm:$0xff] }
 0x889   :  { %955 = vmatprep.subr.bf16.mxu1 %v2000_v7 }
 0x88c   :  { %956 = vmatpush1.bf16.msra.mxu1 %v2005_v8 }
 0x88d   :  { %957 = vmatprep.subr.bf16.mxu1 %v2009_v9 }
 0x890   :  { %958 = vmatpush1.bf16.msra.mxu1 %v2018_v12 }
 0x891   :  { %959 = vmatprep.subr.bf16.mxu1 %v2021_v13 }
 0x894   :  { %960 = vmatpush1.bf16.msra.mxu1 %v2031_v16 }
 0x895   :  { %1223 = vmatprep.subr.bf16.mxu1 %v1996_v5  ;;  %v742_v5 = vld [vmem:[#allocation4] sm:$0xff] }
 0x95a   :  { %v711_v47 = vpop.f32.mrb[16].mxu1 }
 0x95b   :  { %v726_v27 = vadd.f32 %v711_v47, %v156_v45  ;;  %v713_v32 = vpop.f32.mrb[17].mxu1  ;;  %v158_v47 = vadd.f32 %v2154_v41, %v2080_v38 }
 0x95c   :  { %v727_v48 = vadd.f32 %v713_v32, %v164_v46  ;;  %v715_v49 = vpop.f32.mrb[18].mxu1  ;;  %v162_v46 = vadd.f32 %v2054_v20, %v2077_v35 }
 0x95d   :  { %1790 = vtanh.f32 %v726_v27  ;;  %v716_v50 = vpop.f32.mrb[19].mxu1  ;;  %v1637_v21 = vmul.f32 -1.442695, %v726_v27 }
 0x95e   :  { %1792 = vtanh.f32 %v727_v48  ;;  %v1638_v52 = vmul.f32 -1.442695, %v727_v48 }
 0x95f   :  { %1794 = vpow2.f32 %v1637_v21 }
 0x960   :  { %1796 = vpow2.f32 %v1638_v52 }
 0x967   :  { %v1791_v51 = vpop.eup %1790 }
 0x968   :  { %v1793_v24 = vpop.eup %1792  ;;  %749 = vrot.lane.b32.xlu0 %v1791_v51, %s1923_s23 }
 0x969   :  { %765 = vrot.lane.b32.xlu1 %v1793_v24, %s1923_s23  ;;  %v1795_v53 = vpop.eup %1794 }
 0x96a   :  { %v1797_v54 = vpop.eup %1796  ;;  %v731_v55 = vadd.f32 1.0, %v1795_v53 }
 0x96b   :  { %v738_v56 = vadd.f32 1.0, %v1797_v54 }
 0x96c   :  { %744 = vrot.lane.b32.xlu0 %v742_v5, %s1923_s23  ;;  %1798 = vrcp.f32 %v731_v55 }
 0x96d   :  { %760 = vrot.lane.b32.xlu1 %v758_v40, %s1923_s23  ;;  %1800 = vrcp.f32 %v738_v56 }
 0x976   :  { %v1799_v57 = vpop.eup %1798 }
 0x977   :  { %v1801_v59 = vpop.eup %1800 }
 0x9da   :  { %v750_v58 = vpop.permute.xlu0 %749 }
 0x9db   :  { %v752_v60 = vmul.f32 %v1799_v57, %v750_v58  ;;  %v766_v61 = vpop.permute.xlu1 %765 }
 0x9dc   :  { %v768_v62 = vmul.f32 %v1801_v59, %v766_v61 }
 0x9dd   :  { %754 = vrot.lane.b32.xlu0 %v752_v60, %s1923_s23 }
 0x9de   :  { %770 = vrot.lane.b32.xlu1 %v768_v62, %s1923_s23  ;;  %v745_v63 = vpop.permute.xlu0 %744 }
 0x9df   :  { %v761_v1 = vpop.permute.xlu1 %760  ;;  %v747_v2 = vmul.f32 %v1799_v57, %v745_v63 }
 0x9e0   :  { %v763_v3 = vmul.f32 %v1801_v59, %v761_v1 }
 0xa4f   :  { %v755_v4 = vpop.permute.xlu0 %754 }
 0xa50   :  { %v757_v10 = vadd.f32 %v755_v4, %v747_v2  ;;  %v771_v11 = vpop.permute.xlu1 %770 }
 0xa51   :  { %v773_v14 = vadd.f32 %v771_v11, %v763_v3 }
 0xa52   :  { %1802 = vtanh.f32 %v757_v10 }
 0xa53   :  { %1804 = vtanh.f32 %v773_v14 }
 0xa5c   :  { %v1803_v15 = vpop.eup %1802 }
 0xa5d   :  { %v1805_v17 = vpop.eup %1804  ;;  %776 = vrot.lane.b32.xlu0 %v1803_v15, %s1923_s23 }
 0xa5e   :  { %782 = vrot.lane.b32.xlu1 %v1805_v17, %s1923_s23 }
 0xacf   :  { %v777_v23 = vpop.permute.xlu0 %776 }
 0xad0   :  { %v779_v25 = vmul.f32 %v1799_v57, %v777_v23  ;;  %v783_v28 = vpop.permute.xlu1 %782 }
 0xad1   :  { %v2201_v33 = vmul.f32 %v1801_v59, %v783_v28 }
 0xad2   :  { %797 = vrot.lane.b32.xlu0 %v779_v25, %s1924_s2 }
 0xad3   :  { %802 = vrot.lane.b32.xlu1 %v2201_v33, %s1925_s26 }
 0xad6   :  { %787 = vrot.lane.b32.xlu0 %v757_v10, %s1925_s26 }
 0xad7   :  { %792 = vrot.lane.b32.xlu1 %v773_v14, %s1925_s26 }
 0xb44   :  { %v798_v36 = vpop.permute.xlu0 %797 }
 0xb45   :  { %800 = vst.msk [vmem:[#allocation3] sm:$0xff] %vm198_vm1, %v798_v36  ;;  %807 = vst.msk [vmem:[#allocation6 + $0x18] sm:$0xff] %vm198_vm1, %v798_v36  ;;  %v803_v37 = vpop.permute.xlu1 %802 }
 0xb46   :  { %805 = vst.msk [vmem:[#allocation3] sm:$0xff] %vm382_vm3, %v803_v37 }
 0xb48   :  { %v788_v42 = vpop.permute.xlu0 %787 }
 0xb49   :  { %790 = vst.msk [vmem:[#allocation4] sm:$0xff] %vm198_vm1, %v788_v42  ;;  %v793_v43 = vpop.permute.xlu1 %792 }
 0xb4a   :  { %795 = vst.msk [vmem:[#allocation5] sm:$0xff] %vm198_vm1, %v793_v43 }
 0xb4d   :  { %v813_v44 = vld [vmem:[#allocation3] sm:$0xff] }
 0xb4e   :  { %v814_v45 = vpack.c.bf16 %v813_v44, %v813_v44 }
 0xb50   :  { %1639 = vmatmul.mubr.msk.bf16.vlgmr.msra.gmra.mrb[12].mxu0 %vm196_vm0, %v814_v45  ;;  %v877_v40 = vld [vmem:[#allocation4] sm:$0xff] }
 0xb51   :  { %1089 = vmatpush1.bf16.msra.mxu0 %v1998_v6  ;;  %1120 = vmatprep.mubr.bf16.mxu0 %v1921_v0  ;;  %v893_v20 = vld [vmem:[#allocation5] sm:$0xff] }
 0xb52   :  { %1090 = vmatprep.subr.bf16.mxu0 %v2000_v7 }
 0xb55   :  { %1091 = vmatpush1.bf16.msra.mxu0 %v2005_v8 }
 0xb56   :  { %1092 = vmatprep.subr.bf16.mxu0 %v2009_v9 }
 0xb59   :  { %1093 = vmatpush1.bf16.msra.mxu0 %v2018_v12 }
 0xb5a   :  { %1094 = vmatprep.subr.bf16.mxu0 %v2021_v13 }
 0xb5d   :  { %1095 = vmatpush1.bf16.msra.mxu0 %v2031_v16 }
 0xc23   :  { %v852_v27 = vpop.f32.mrb[12].mxu0 }
 0xc24   :  { %v861_v32 = vadd.f32 %v852_v27, %v162_v46  ;;  %v854_v48 = vpop.f32.mrb[13].mxu0  ;;  %v166_v46 = vadd.f32 %v2058_v22, %v2077_v35 }
 0xc25   :  { %v862_v49 = vadd.f32 %v854_v48, %v158_v47  ;;  %v856_v50 = vpop.f32.mrb[14].mxu0 }
 0xc26   :  { %1806 = vtanh.f32 %v861_v32  ;;  %v857_v51 = vpop.f32.mrb[15].mxu0  ;;  %v1640_v41 = vmul.f32 -1.442695, %v861_v32 }
 0xc27   :  { %1808 = vtanh.f32 %v862_v49  ;;  %v1641_v21 = vmul.f32 -1.442695, %v862_v49 }
 0xc28   :  { %1810 = vpow2.f32 %v1640_v41 }
 0xc29   :  { %1812 = vpow2.f32 %v1641_v21 }
 0xc30   :  { %v1807_v24 = vpop.eup %1806 }
 0xc31   :  { %v1809_v5 = vpop.eup %1808  ;;  %884 = vrot.lane.b32.xlu0 %v1807_v24, %s1923_s23 }
 0xc32   :  { %900 = vrot.lane.b32.xlu1 %v1809_v5, %s1923_s23  ;;  %v1811_v52 = vpop.eup %1810 }
 0xc33   :  { %v1813_v53 = vpop.eup %1812  ;;  %v866_v54 = vadd.f32 1.0, %v1811_v52 }
 0xc34   :  { %v873_v55 = vadd.f32 1.0, %v1813_v53 }
 0xc35   :  { %879 = vrot.lane.b32.xlu0 %v877_v40, %s1923_s23  ;;  %1814 = vrcp.f32 %v866_v54 }
 0xc36   :  { %895 = vrot.lane.b32.xlu1 %v893_v20, %s1923_s23  ;;  %1816 = vrcp.f32 %v873_v55 }
 0xc3f   :  { %v1815_v56 = vpop.eup %1814 }
 0xc40   :  { %v1817_v58 = vpop.eup %1816 }
 0xca3   :  { %v885_v57 = vpop.permute.xlu0 %884 }
 0xca4   :  { %v887_v59 = vmul.f32 %v1815_v56, %v885_v57  ;;  %v901_v60 = vpop.permute.xlu1 %900 }
 0xca5   :  { %v903_v61 = vmul.f32 %v1817_v58, %v901_v60 }
 0xca6   :  { %889 = vrot.lane.b32.xlu0 %v887_v59, %s1923_s23 }
 0xca7   :  { %905 = vrot.lane.b32.xlu1 %v903_v61, %s1923_s23  ;;  %v880_v62 = vpop.permute.xlu0 %879 }
 0xca8   :  { %v896_v63 = vpop.permute.xlu1 %895  ;;  %v882_v1 = vmul.f32 %v1815_v56, %v880_v62 }
 0xca9   :  { %v898_v2 = vmul.f32 %v1817_v58, %v896_v63 }
 0xd18   :  { %v890_v3 = vpop.permute.xlu0 %889 }
 0xd19   :  { %v892_v4 = vadd.f32 %v890_v3, %v882_v1  ;;  %v906_v10 = vpop.permute.xlu1 %905 }
 0xd1a   :  { %v908_v11 = vadd.f32 %v906_v10, %v898_v2 }
 0xd1b   :  { %1818 = vtanh.f32 %v892_v4 }
 0xd1c   :  { %1820 = vtanh.f32 %v908_v11 }
 0xd25   :  { %v1819_v14 = vpop.eup %1818 }
 0xd26   :  { %v1821_v15 = vpop.eup %1820  ;;  %911 = vrot.lane.b32.xlu0 %v1819_v14, %s1923_s23 }
 0xd27   :  { %917 = vrot.lane.b32.xlu1 %v1821_v15, %s1923_s23 }
 0xd98   :  { %v912_v17 = vpop.permute.xlu0 %911 }
 0xd99   :  { %v914_v23 = vmul.f32 %v1815_v56, %v912_v17  ;;  %v918_v25 = vpop.permute.xlu1 %917  ;;  %v172_v17 = vadd.f32 %v2071_v31, %v2077_v35 }
 0xd9a   :  { %v2234_v28 = vmul.f32 %v1817_v58, %v918_v25 }
 0xd9b   :  { %932 = vrot.lane.b32.xlu0 %v914_v23, %s1924_s2  ;;  %v148_v23 = vadd.f32 %v2066_v29, %v2080_v38 }
 0xd9c   :  { %937 = vrot.lane.b32.xlu1 %v2234_v28, %s1925_s26 }
 0xd9f   :  { %922 = vrot.lane.b32.xlu0 %v892_v4, %s1925_s26 }
 0xda0   :  { %927 = vrot.lane.b32.xlu1 %v908_v11, %s1925_s26 }
 0xe0d   :  { %v933_v36 = vpop.permute.xlu0 %932 }
 0xe0e   :  { %935 = vst.msk [vmem:[#allocation3] sm:$0xff] %vm198_vm1, %v933_v36  ;;  %942 = vst.msk [vmem:[#allocation6 + $0x20] sm:$0xff] %vm198_vm1, %v933_v36  ;;  %v938_v37 = vpop.permute.xlu1 %937 }
 0xe0f   :  { %940 = vst.msk [vmem:[#allocation3] sm:$0xff] %vm382_vm3, %v938_v37 }
 0xe11   :  { %v923_v42 = vpop.permute.xlu0 %922 }
 0xe12   :  { %925 = vst.msk [vmem:[#allocation4] sm:$0xff] %vm198_vm1, %v923_v42  ;;  %v928_v43 = vpop.permute.xlu1 %927 }
 0xe13   :  { %930 = vst.msk [vmem:[#allocation5] sm:$0xff] %vm198_vm1, %v928_v43 }
 0xe16   :  { %v948_v44 = vld [vmem:[#allocation3] sm:$0xff] }
 0xe17   :  { %v949_v45 = vpack.c.bf16 %v948_v44, %v948_v44 }
 0xe19   :  { %1642 = vmatmul.mubr.msk.bf16.vlgmr.msra.gmra.mrb[20].mxu1 %vm196_vm0, %v949_v45 }
 0xe1a   :  { %1224 = vmatpush1.bf16.msra.mxu1 %v1998_v6  ;;  %1255 = vmatprep.mubr.bf16.mxu1 %v1921_v0  ;;  %v154_v6 = vadd.f32 %v2150_v39, %v2080_v38 }
 0xe1b   :  { %1225 = vmatprep.subr.bf16.mxu1 %v2000_v7 }
 0xe1e   :  { %1226 = vmatpush1.bf16.msra.mxu1 %v2005_v8 }
 0xe1f   :  { %1227 = vmatprep.subr.bf16.mxu1 %v2009_v9 }
 0xe22   :  { %1228 = vmatpush1.bf16.msra.mxu1 %v2018_v12 }
 0xe23   :  { %1229 = vmatprep.subr.bf16.mxu1 %v2021_v13  ;;  %v1012_v13 = vld [vmem:[#allocation4] sm:$0xff] }
 0xe26   :  { %1230 = vmatpush1.bf16.msra.mxu1 %v2031_v16  ;;  %v1028_v16 = vld [vmem:[#allocation5] sm:$0xff] }
 0xeec   :  { %v987_v47 = vpop.f32.mrb[20].mxu1 }
 0xeed   :  { %v996_v0 = vadd.f32 %v987_v47, %v166_v46  ;;  %v989_v27 = vpop.f32.mrb[21].mxu1 }
 0xeee   :  { %v997_v7 = vadd.f32 %v989_v27, %v154_v6  ;;  %v991_v32 = vpop.f32.mrb[22].mxu1 }
 0xeef   :  { %1822 = vtanh.f32 %v996_v0  ;;  %v992_v8 = vpop.f32.mrb[23].mxu1  ;;  %v1643_v22 = vmul.f32 -1.442695, %v996_v0 }
 0xef0   :  { %1824 = vtanh.f32 %v997_v7  ;;  %v1644_v39 = vmul.f32 -1.442695, %v997_v7 }
 0xef1   :  { %1826 = vpow2.f32 %v1643_v22 }
 0xef2   :  { %1828 = vpow2.f32 %v1644_v39 }
 0xef9   :  { %v1823_v9 = vpop.eup %1822 }
 0xefa   :  { %v1825_v12 = vpop.eup %1824  ;;  %1019 = vrot.lane.b32.xlu0 %v1823_v9, %s1923_s23 }
 0xefb   :  { %1035 = vrot.lane.b32.xlu1 %v1825_v12, %s1923_s23  ;;  %v1827_v48 = vpop.eup %1826 }
 0xefc   :  { %v1829_v49 = vpop.eup %1828  ;;  %v1001_v50 = vadd.f32 1.0, %v1827_v48 }
 0xefd   :  { %v1008_v51 = vadd.f32 1.0, %v1829_v49 }
 0xefe   :  { %1014 = vrot.lane.b32.xlu0 %v1012_v13, %s1923_s23  ;;  %1830 = vrcp.f32 %v1001_v50 }
 0xeff   :  { %1030 = vrot.lane.b32.xlu1 %v1028_v16, %s1923_s23  ;;  %1832 = vrcp.f32 %v1008_v51 }
 0xf08   :  { %v1831_v24 = vpop.eup %1830 }
 0xf09   :  { %v1833_v40 = vpop.eup %1832 }
 0xf6c   :  { %v1020_v5 = vpop.permute.xlu0 %1019 }
 0xf6d   :  { %v1022_v20 = vmul.f32 %v1831_v24, %v1020_v5  ;;  %v1036_v41 = vpop.permute.xlu1 %1035 }
 0xf6e   :  { %v1038_v21 = vmul.f32 %v1833_v40, %v1036_v41 }
 0xf6f   :  { %1024 = vrot.lane.b32.xlu0 %v1022_v20, %s1923_s23 }
 0xf70   :  { %1040 = vrot.lane.b32.xlu1 %v1038_v21, %s1923_s23  ;;  %v1015_v52 = vpop.permute.xlu0 %1014 }
 0xf71   :  { %v1031_v53 = vpop.permute.xlu1 %1030  ;;  %v1017_v54 = vmul.f32 %v1831_v24, %v1015_v52 }
 0xf72   :  { %v1033_v55 = vmul.f32 %v1833_v40, %v1031_v53 }
 0xfe1   :  { %v1025_v56 = vpop.permute.xlu0 %1024 }
 0xfe2   :  { %v1027_v57 = vadd.f32 %v1025_v56, %v1017_v54  ;;  %v1041_v58 = vpop.permute.xlu1 %1040 }
 0xfe3   :  { %v1043_v59 = vadd.f32 %v1041_v58, %v1033_v55 }
 0xfe4   :  { %1834 = vtanh.f32 %v1027_v57 }
 0xfe5   :  { %1836 = vtanh.f32 %v1043_v59 }
 0xfee   :  { %v1835_v60 = vpop.eup %1834 }
 0xfef   :  { %v1837_v61 = vpop.eup %1836  ;;  %1046 = vrot.lane.b32.xlu0 %v1835_v60, %s1923_s23 }
 0xff0   :  { %1052 = vrot.lane.b32.xlu1 %v1837_v61, %s1923_s23 }
0x1061   :  { %v1047_v62 = vpop.permute.xlu0 %1046 }
0x1062   :  { %v1049_v63 = vmul.f32 %v1831_v24, %v1047_v62  ;;  %v1053_v1 = vpop.permute.xlu1 %1052 }
0x1063   :  { %v2267_v2 = vmul.f32 %v1833_v40, %v1053_v1  ;;  %v144_v1 = vadd.f32 %v2062_v26, %v2080_v38 }
0x1064   :  { %1067 = vrot.lane.b32.xlu0 %v1049_v63, %s1924_s2  ;;  %v176_v63 = vadd.f32 %v2075_v34, %v2077_v35 }
0x1065   :  { %1072 = vrot.lane.b32.xlu1 %v2267_v2, %s1925_s26 }
0x1068   :  { %1057 = vrot.lane.b32.xlu0 %v1027_v57, %s1925_s26 }
0x1069   :  { %1062 = vrot.lane.b32.xlu1 %v1043_v59, %s1925_s26 }
0x10d6   :  { %v1068_v3 = vpop.permute.xlu0 %1067 }
0x10d7   :  { %1070 = vst.msk [vmem:[#allocation3] sm:$0xff] %vm198_vm1, %v1068_v3  ;;  %1077 = vst.msk [vmem:[#allocation6 + $0x28] sm:$0xff] %vm198_vm1, %v1068_v3  ;;  %v1073_v4 = vpop.permute.xlu1 %1072 }
0x10d8   :  { %1075 = vst.msk [vmem:[#allocation3] sm:$0xff] %vm382_vm3, %v1073_v4 }
0x10da   :  { %v1058_v10 = vpop.permute.xlu0 %1057 }
0x10db   :  { %1060 = vst.msk [vmem:[#allocation4] sm:$0xff] %vm198_vm1, %v1058_v10  ;;  %v1063_v11 = vpop.permute.xlu1 %1062 }
0x10dc   :  { %1065 = vst.msk [vmem:[#allocation5] sm:$0xff] %vm198_vm1, %v1063_v11 }
0x10df   :  { %v1083_v14 = vld [vmem:[#allocation3] sm:$0xff] }
0x10e0   :  { %v1084_v15 = vpack.c.bf16 %v1083_v14, %v1083_v14 }
0x10e2   :  { %1645 = vmatmul.mubr.msk.bf16.vlgmr.msra.gmra.mrb[16].mxu0 %vm196_vm0, %v1084_v15  ;;  %v1147_v6 = vld [vmem:[#allocation4] sm:$0xff] }
0x10e3   :  { %v1163_v31 = vld [vmem:[#allocation5] sm:$0xff] }
0x11b5   :  { %v1122_v25 = vpop.f32.mrb[16].mxu0 }
0x11b6   :  { %v1131_v36 = vadd.f32 %v1122_v25, %v172_v17  ;;  %v1124_v37 = vpop.f32.mrb[17].mxu0 }
0x11b7   :  { %v1132_v42 = vadd.f32 %v1124_v37, %v148_v23  ;;  %v1126_v43 = vpop.f32.mrb[18].mxu0 }
0x11b8   :  { %1838 = vtanh.f32 %v1131_v36  ;;  %v1127_v44 = vpop.f32.mrb[19].mxu0  ;;  %v1646_v29 = vmul.f32 -1.442695, %v1131_v36 }
0x11b9   :  { %1840 = vtanh.f32 %v1132_v42  ;;  %v1647_v47 = vmul.f32 -1.442695, %v1132_v42 }
0x11ba   :  { %1842 = vpow2.f32 %v1646_v29 }
0x11bb   :  { %1844 = vpow2.f32 %v1647_v47 }
0x11c2   :  { %v1839_v45 = vpop.eup %1838 }
0x11c3   :  { %v1841_v46 = vpop.eup %1840  ;;  %1154 = vrot.lane.b32.xlu0 %v1839_v45, %s1923_s23 }
0x11c4   :  { %1170 = vrot.lane.b32.xlu1 %v1841_v46, %s1923_s23  ;;  %v1843_v0 = vpop.eup %1842 }
0x11c5   :  { %v1845_v27 = vpop.eup %1844  ;;  %v1136_v7 = vadd.f32 1.0, %v1843_v0 }
0x11c6   :  { %v1143_v32 = vadd.f32 1.0, %v1845_v27 }
0x11c7   :  { %1149 = vrot.lane.b32.xlu0 %v1147_v6, %s1923_s23  ;;  %1846 = vrcp.f32 %v1136_v7 }
0x11c8   :  { %1165 = vrot.lane.b32.xlu1 %v1163_v31, %s1923_s23  ;;  %1848 = vrcp.f32 %v1143_v32 }
0x11d1   :  { %v1847_v8 = vpop.eup %1846 }
0x11d2   :  { %v1849_v12 = vpop.eup %1848 }
0x1235   :  { %v1155_v9 = vpop.permute.xlu0 %1154 }
0x1236   :  { %v1157_v13 = vmul.f32 %v1847_v8, %v1155_v9  ;;  %v1171_v16 = vpop.permute.xlu1 %1170 }
0x1237   :  { %v1173_v22 = vmul.f32 %v1849_v12, %v1171_v16 }
0x1238   :  { %1159 = vrot.lane.b32.xlu0 %v1157_v13, %s1923_s23  ;;  %v1739_v13 = vld [vmem:[%s2392_s5 + $0x8] sm:$0xff]  }
0x1239   :  { %1175 = vrot.lane.b32.xlu1 %v1173_v22, %s1923_s23  ;;  %v1150_v39 = vpop.permute.xlu0 %1149 }
0x123a   :  { %v1166_v48 = vpop.permute.xlu1 %1165  ;;  %v1152_v49 = vmul.f32 %v1847_v8, %v1150_v39 }
0x123b   :  { %v1168_v50 = vmul.f32 %v1849_v12, %v1166_v48 }
0x12aa   :  { %v1160_v51 = vpop.permute.xlu0 %1159 }
0x12ab   :  { %v1162_v24 = vadd.f32 %v1160_v51, %v1152_v49  ;;  %v1176_v5 = vpop.permute.xlu1 %1175 }
0x12ac   :  { %v1178_v40 = vadd.f32 %v1176_v5, %v1168_v50 }
0x12ad   :  { %1850 = vtanh.f32 %v1162_v24 }
0x12ae   :  { %1852 = vtanh.f32 %v1178_v40 }
0x12b7   :  { %v1851_v20 = vpop.eup %1850 }
0x12b8   :  { %v1853_v41 = vpop.eup %1852  ;;  %1181 = vrot.lane.b32.xlu0 %v1851_v20, %s1923_s23 }
0x12b9   :  { %1187 = vrot.lane.b32.xlu1 %v1853_v41, %s1923_s23 }
0x132a   :  { %v1182_v21 = vpop.permute.xlu0 %1181 }
0x132b   :  { %v1184_v52 = vmul.f32 %v1847_v8, %v1182_v21  ;;  %v1188_v53 = vpop.permute.xlu1 %1187 }
0x132c   :  { %v2292_v54 = vmul.f32 %v1849_v12, %v1188_v53  ;;  %v1738_v12 = vld [vmem:[%s2392_s5] sm:$0xff]  }
0x132d   :  { %1202 = vrot.lane.b32.xlu0 %v1184_v52, %s1924_s2  ;;  %1676 = vmatprep.subr.bf16.mxu0 %v1738_v12 }
0x132e   :  { %1207 = vrot.lane.b32.xlu1 %v2292_v54, %s1925_s26  ;;  %1677 = vmatpush3.bf16.msra.mxu0 %v1738_v12 }
0x132f   :  { %1678 = vmatprep.subr.bf16.mxu0 %v1739_v13 }
0x1331   :  { %1197 = vrot.lane.b32.xlu0 %v1178_v40, %s1925_s26 }
0x1332   :  { %1679 = vmatpush3.bf16.msra.mxu0 %v1739_v13 }
0x1335   :  { %1192 = vrot.lane.b32.xlu0 %v1162_v24, %s1925_s26 }
0x139f   :  { %v1203_v55 = vpop.permute.xlu0 %1202 }
0x13a0   :  { %1205 = vst.msk [vmem:[#allocation3] sm:$0xff] %vm198_vm1, %v1203_v55  ;;  %1212 = vst.msk [vmem:[#allocation6 + $0x30] sm:$0xff] %vm198_vm1, %v1203_v55  ;;  %v1208_v56 = vpop.permute.xlu1 %1207 }
0x13a1   :  { %1210 = vst.msk [vmem:[#allocation3] sm:$0xff] %vm382_vm3, %v1208_v56 }
0x13a3   :  { %v1198_v57 = vpop.permute.xlu0 %1197 }
0x13a4   :  { %1200 = vst.msk [vmem:[#allocation5] sm:$0xff] %vm198_vm1, %v1198_v57 }
0x13a7   :  { %v1193_v58 = vpop.permute.xlu0 %1192 }
0x13a8   :  { %1195 = vst.msk [vmem:[#allocation4] sm:$0xff] %vm198_vm1, %v1193_v58  ;;  %v1218_v59 = vld [vmem:[#allocation3] sm:$0xff] }
0x13a9   :  { %v1219_v60 = vpack.c.bf16 %v1218_v59, %v1218_v59  ;;  %v1353_v59 = vld [vmem:[#allocation6 + $0x8] sm:$0xff] }
0x13ab   :  { %1648 = vmatmul.mubr.msk.bf16.vlgmr.msra.gmra.mrb[24].mxu1 %vm196_vm0, %v1219_v60  ;;  %v1298_v61 = vld [vmem:[#allocation5] sm:$0xff] }
0x13ac   :  { %1300 = vrot.lane.b32.xlu0 %v1298_v61, %s1923_s23 }
0x13af   :  { %v1282_v62 = vld [vmem:[#allocation4] sm:$0xff] }
0x13b0   :  { %1284 = vrot.lane.b32.xlu0 %v1282_v62, %s1923_s23 }
0x141e   :  { %v1301_v6 = vpop.permute.xlu0 %1300 }
0x1422   :  { %v1285_v0 = vpop.permute.xlu0 %1284 }
0x147e   :  { %v1257_v3 = vpop.f32.mrb[24].mxu1 }
0x147f   :  { %v1266_v4 = vadd.f32 %v1257_v3, %v176_v63  ;;  %v1259_v10 = vpop.f32.mrb[25].mxu1 }
0x1480   :  { %v1267_v11 = vadd.f32 %v1259_v10, %v144_v1  ;;  %v1261_v14 = vpop.f32.mrb[26].mxu1  ;;  %v1352_v1 = vld [vmem:[#allocation6] sm:$0xff]  ;;  %v1357_v10 = vld [vmem:[#allocation6 + $0x28] sm:$0xff] }
0x1481   :  { %v1262_v15 = vpop.f32.mrb[27].mxu1  ;;  %v1649_v36 = vmul.f32 -1.442695, %v1266_v4  ;;  %v1360_v3 = vpack.c.bf16 %v1353_v59, %v1352_v1 }
0x1482   :  { %1854 = vtanh.f32 %v1267_v11  ;;  %v1650_v25 = vmul.f32 -1.442695, %v1267_v11  ;;  %v1354_v11 = vld [vmem:[#allocation6 + $0x10] sm:$0xff]  ;;  %v1356_v15 = vld [vmem:[#allocation6 + $0x20] sm:$0xff] }
0x1483   :  { %1856 = vtanh.f32 %v1266_v4  ;;  %v1355_v4 = vld [vmem:[#allocation6 + $0x18] sm:$0xff] }
0x1484   :  { %1858 = vpow2.f32 %v1650_v25  ;;  %v1361_v14 = vpack.c.bf16 %v1355_v4, %v1354_v11  ;;  %v1358_v25 = vld [vmem:[#allocation6 + $0x30] sm:$0xff] }
0x1485   :  { %1860 = vpow2.f32 %v1649_v36 }
0x148c   :  { %v1855_v17 = vpop.eup %1854 }
0x148d   :  { %1305 = vrot.lane.b32.xlu1 %v1855_v17, %s1923_s23  ;;  %v1857_v23 = vpop.eup %1856  ;;  %v1362_v17 = vpack.c.bf16 %v1357_v10, %v1356_v15 }
0x148e   :  { %v1859_v34 = vpop.eup %1858 }
0x148f   :  { %v1278_v26 = vadd.f32 1.0, %v1859_v34  ;;  %v1861_v35 = vpop.eup %1860  ;;  %v1663_v34 = vld [vmem:[%s2393_s6] ss:$0 sm:$0xff]  ;;  %s1892_s6 = scalar_lea.vmem %s1591_s16, 1024 }
0x1490   :  { %v1271_v38 = vadd.f32 1.0, %v1861_v35  ;;  %p1893_p8 = scmp.ne.s32.totalorder %s1591_s16, %s1892_s6  ;;  %p1898_p10 = scmp.lt.s32.totalorder %s1892_s6, %s1892_s6 }
0x1491   :  { %1289 = vrot.lane.b32.xlu1 %v1857_v23, %s1923_s23  ;;  %1862 = vrcp.f32 %v1278_v26 }
0x1492   :  { %1864 = vrcp.f32 %v1271_v38  ;;  %p1899_p11 = por %p1898_p10, %p1897_p9 }
0x1494   :  { %p1900_p12 = pnand %p1899_p11, %p1893_p8 }
0x149b   :  { %v1863_v37 = vpop.eup %1862 }
0x149c   :  { %v1865_v44 = vpop.eup %1864  ;;  %v1303_v31 = vmul.f32 %v1863_v37, %v1301_v6 }
0x149d   :  { %v1287_v27 = vmul.f32 %v1865_v44, %v1285_v0 }
0x14ff   :  { %v1306_v42 = vpop.permute.xlu1 %1305 }
0x1500   :  { %v1308_v43 = vmul.f32 %v1863_v37, %v1306_v42 }
0x1502   :  { %1310 = vrot.lane.b32.xlu1 %v1308_v43, %s1923_s23 }
0x1503   :  { %v1290_v45 = vpop.permute.xlu1 %1289 }
0x1504   :  { %v1292_v46 = vmul.f32 %v1865_v44, %v1290_v45 }
0x1506   :  { %1294 = vrot.lane.b32.xlu1 %v1292_v46, %s1923_s23 }
0x1574   :  { %v1311_v29 = vpop.permute.xlu1 %1310 }
0x1575   :  { %v1313_v47 = vadd.f32 %v1311_v29, %v1303_v31 }
0x1577   :  { %1866 = vtanh.f32 %v1313_v47 }
0x1578   :  { %v1295_v7 = vpop.permute.xlu1 %1294 }
0x1579   :  { %v1297_v32 = vadd.f32 %v1295_v7, %v1287_v27 }
0x157b   :  { %1868 = vtanh.f32 %v1297_v32 }
0x1581   :  { %v1867_v8 = vpop.eup %1866 }
0x1582   :  { %1322 = vrot.lane.b32.xlu0 %v1867_v8, %s1923_s23 }
0x1585   :  { %v1869_v9 = vpop.eup %1868 }
0x1586   :  { %1213 = vrot.lane.b32.xlu0 %v2292_v54, %s1924_s2  ;;  %1316 = vrot.lane.b32.xlu1 %v1869_v9, %s1923_s23  ;;  %v1741_v54 = vld [vmem:[%s2391_s4 + $0x8] sm:$0xff]  }
0x158a   :  { %943 = vrot.lane.b32.xlu0 %v2234_v28, %s1924_s2 }
0x158e   :  { %667 = vrot.lane.b32.xlu0 %v2167_v30, %s1924_s2 }
0x1592   :  { %385 = vrot.lane.b32.xlu0 %v2090_v18, %s1924_s2  ;;  %v1740_v18 = vld [vmem:[%s2391_s4] sm:$0xff]  }
0x1593   :  { %1688 = vmatprep.subr.bf16.mxu0 %v1740_v18 }
0x15f4   :  { %v1323_v16 = vpop.permute.xlu0 %1322 }
0x15f5   :  { %v1325_v22 = vmul.f32 %v1863_v37, %v1323_v16 }
0x15f7   :  { %1348 = vrot.lane.b32.xlu1 %v1325_v22, %s1924_s2 }
0x15f8   :  { %v1317_v30 = vpop.permute.xlu1 %1316  ;;  %v1214_v28 = vpop.permute.xlu0 %1213 }
0x15f9   :  { %v1319_v39 = vmul.f32 %v1865_v44, %v1317_v30  ;;  %1217 = vst.msk [vmem:[#allocation7 + $0x8] sm:$0xff] %vm198_vm1, %v1214_v28 }
0x15fb   :  { %1337 = vrot.lane.b32.xlu0 %v1319_v39, %s1924_s2  ;;  %1078 = vrot.lane.b32.xlu1 %v2267_v2, %s1924_s2 }
0x15fc   :  { %v944_v48 = vpop.permute.xlu0 %943 }
0x15fd   :  { %947 = vst.msk [vmem:[#allocation7 + $0x18] sm:$0xff] %vm198_vm1, %v944_v48 }
0x15ff   :  { %1332 = vrot.lane.b32.xlu0 %v1313_v47, %s1925_s26  ;;  %808 = vrot.lane.b32.xlu1 %v2201_v33, %s1924_s2 }
0x1600   :  { %v668_v49 = vpop.permute.xlu0 %667  ;;  %v1369_v40 = vld [vmem:[#allocation7 + $0x8] sm:$0xff] }
0x1601   :  { %671 = vst.msk [vmem:[#allocation7 + $0x28] sm:$0xff] %vm198_vm1, %v668_v49 }
0x1603   :  { %526 = vrot.lane.b32.xlu1 %v2128_v19, %s1924_s2 }
0x1604   :  { %v386_v50 = vpop.permute.xlu0 %385  ;;  %v1371_v52 = vld [vmem:[#allocation7 + $0x18] sm:$0xff] }
0x1605   :  { %389 = vst.msk [vmem:[#allocation7 + $0x38] sm:$0xff] %vm198_vm1, %v386_v50 }
0x1607   :  { %1327 = vrot.lane.b32.xlu1 %v1297_v32, %s1925_s26 }
0x1608   :  { %v1373_v57 = vld [vmem:[#allocation7 + $0x28] sm:$0xff] }
0x160b   :  { %1342 = vrot.lane.b32.xlu1 %v1325_v22, %s1925_s26 }
0x160c   :  { %v1375_v62 = vld [vmem:[#allocation7 + $0x38] sm:$0xff] }
0x1669   :  { %v1349_v2 = vpop.permute.xlu1 %1348 }
0x166a   :  { %1351 = vst.msk [vmem:[#allocation7] sm:$0xff] %vm198_vm1, %v1349_v2 }
0x166d   :  { %v1079_v51 = vpop.permute.xlu1 %1078  ;;  %v1338_v24 = vpop.permute.xlu0 %1337 }
0x166e   :  { %1082 = vst.msk [vmem:[#allocation7 + $0x10] sm:$0xff] %vm198_vm1, %v1079_v51  ;;  %1340 = vst.msk [vmem:[#allocation3] sm:$0xff] %vm198_vm1, %v1338_v24 }
0x166f   :  { %1347 = vst.msk [vmem:[#allocation6 + $0x38] sm:$0xff] %vm198_vm1, %v1338_v24 }
0x1671   :  { %v809_v33 = vpop.permute.xlu1 %808  ;;  %v1333_v19 = vpop.permute.xlu0 %1332  ;;  %v1368_v5 = vld [vmem:[#allocation7] sm:$0xff] }
0x1672   :  { %812 = vst.msk [vmem:[#allocation7 + $0x20] sm:$0xff] %vm198_vm1, %v809_v33  ;;  %1335 = vst.msk [vmem:[#allocation5] sm:$0xff] %vm198_vm1, %v1333_v19  ;;  %v1376_v20 = vpack.c.bf16 %v1369_v40, %v1368_v5 }
0x1674   :  { %1680 = vmatprep.mubr.msk.bf16.mxu0 %vm198_vm1, %v1376_v20 }
0x1675   :  { %v527_v41 = vpop.permute.xlu1 %526  ;;  %v1370_v21 = vld [vmem:[#allocation7 + $0x10] sm:$0xff] }
0x1676   :  { %530 = vst.msk [vmem:[#allocation7 + $0x30] sm:$0xff] %vm198_vm1, %v527_v41  ;;  %v1377_v53 = vpack.c.bf16 %v1371_v52, %v1370_v21  ;;  %v1359_v23 = vld [vmem:[#allocation6 + $0x38] sm:$0xff] }
0x1677   :  { %v1363_v36 = vpack.c.bf16 %v1359_v23, %v1358_v25 }
0x1678   :  { %1681 = vmatmul.mubr.msk.bf16.vlgmr.msra.gmra.mrb[20].mxu0 %vm198_vm1, %v1377_v53 }
0x1679   :  { %v1328_v55 = vpop.permute.xlu1 %1327  ;;  %1689 = vmatpush3.bf16.msra.mxu0 %v1740_v18  ;;  %v1372_v56 = vld [vmem:[#allocation7 + $0x20] sm:$0xff] }
0x167a   :  { %1330 = vst.msk [vmem:[#allocation4] sm:$0xff] %vm198_vm1, %v1328_v55  ;;  %v1378_v58 = vpack.c.bf16 %v1373_v57, %v1372_v56  ;;  %1690 = vmatprep.subr.bf16.mxu0 %v1741_v54 }
0x167c   :  { %1684 = vmatprep.mubr.msk.bf16.mxu0 %vm198_vm1, %v1378_v58 }
0x167d   :  { %v1343_v60 = vpop.permute.xlu1 %1342  ;;  %v1374_v61 = vld [vmem:[#allocation7 + $0x30] sm:$0xff]  ;;  %1691 = vmatpush3.bf16.msra.mxu0 %v1741_v54 }
0x167e   :  { %1345 = vst.msk [vmem:[#allocation3] sm:$0xff] %vm382_vm3, %v1343_v60  ;;  %v1379_v63 = vpack.c.bf16 %v1375_v62, %v1374_v61 }
0x1680   :  { %1685 = vmatmul.mubr.msk.bf16.gmra.mrb[24].mxu0 %vm198_vm1, %v1379_v63 }
0x1681   :  { %1692 = vmatprep.mubr.msk.bf16.mxu0 %vm198_vm1, %v1360_v3 }
0x1688   :  { %1693 = vmatmul.mubr.msk.bf16.vlgmr.msra.gmra.mrb[20].mxu0 %vm198_vm1, %v1361_v14 }
0x1689   :  { %1696 = vmatprep.mubr.msk.bf16.mxu0 %vm198_vm1, %v1362_v17 }
0x1690   :  { %1697 = vmatmul.mubr.msk.bf16.gmra.mrb[24].mxu0 %vm198_vm1, %v1363_v36 }
0x175b   :  { %v1694_v26 = vpop.f32.mrb[20].mxu0 }
0x175c   :  { %v1571_v35 = vadd.f32 %v1694_v26, %v1663_v34  ;;  %v1531_v38 = vpop.f32.mrb[21].mxu0 }
0x175d   :  { %v1569_v37 = vadd.f32 %v1663_v34, %v1531_v38  ;;  %v1695_v42 = vpop.f32.mrb[22].mxu0 }
0x175e   :  { %1579 = vst [vmem:[#allocation11 + $0x10] sm:$0xff] %v1571_v35  ;;  %v1572_v43 = vadd.f32 %v1695_v42, %v1663_v34  ;;  %v1534_v44 = vpop.f32.mrb[23].mxu0 }
0x175f   :  { %1577 = vst [vmem:[#allocation11] sm:$0xff] %v1569_v37  ;;  %v1570_v45 = vadd.f32 %v1663_v34, %v1534_v44 }
0x1760   :  { %1580 = vst [vmem:[#allocation11 + $0x18] sm:$0xff] %v1572_v43 }
0x1761   :  { %1578 = vst [vmem:[#allocation11 + $0x8] sm:$0xff] %v1570_v45 }
0x1763   :  { %v1698_v46 = vpop.f32.mrb[24].mxu0 }
0x1764   :  { %v1575_v6 = vadd.f32 %v1698_v46, %v1663_v34  ;;  %v1547_v31 = vpop.f32.mrb[25].mxu0 }
0x1765   :  { %v1573_v29 = vadd.f32 %v1663_v34, %v1547_v31  ;;  %v1699_v47 = vpop.f32.mrb[26].mxu0 }
0x1766   :  { %1583 = vst [vmem:[#allocation11 + $0x30] sm:$0xff] %v1575_v6  ;;  %v1576_v0 = vadd.f32 %v1699_v47, %v1663_v34  ;;  %v1550_v27 = vpop.f32.mrb[27].mxu0 }
0x1767   :  { %1581 = vst [vmem:[#allocation11 + $0x20] sm:$0xff] %v1573_v29  ;;  %v1574_v7 = vadd.f32 %v1663_v34, %v1550_v27 }
0x1768   :  { %1584 = vst [vmem:[#allocation11 + $0x38] sm:$0xff] %v1576_v0 }
0x1769   :  { %1582 = vst [vmem:[#allocation11 + $0x28] sm:$0xff] %v1574_v7 }
0x176a   :  { %1903 = shalt.err (!%p1900_p12)
}
0x176b   :  { %s1904_s18 = scalar_lea.hbm %s2394_s7, 1024 }
0x176c   :  { %p1905_p13 = scmp.ne.s32.totalorder %s2394_s7, %s1904_s18  ;;  %p1908_p0 = scmp.lt.u32.totalorder %s1904_s18, %s2394_s7 }
0x176e   :  { %p1910_p1 = pnand %p1908_p0, %p1905_p13 }
0x1770   :  { %1913 = shalt.err (!%p1910_p1)
}
0x1771   :  { %1596 = dma.vmem_to_hbm [thread:$0]  %s1591_s16, 1024, %s2394_s7, [#allocation10], %s1919_s11, %s1919_s11, %s1920_s12  }
0x1772   :  { %1916 = dma.done.wait [#allocation10], 1024  }
0x1773   :  { %1917 = vsyncadd [#allocation10], 4294966272 }
0x1774   :  { %1600 = vsyncpa [#allocation9], 1 }
0x1775   :  { %1601 = vsyncpa [#allocation10], 1 }

</bundles_post_ra>
